<compile_context>
chip_gen: v6e
topology: v6e:2x2x1
jax: 0.10.0
libtpu: 0.0.40
codegen_flags: <defaults>
</compile_context>

<pallas_src>
import jax
import jax.numpy as jnp
from jax import lax
from jax.experimental import pallas as pl
from jax.experimental.pallas import tpu as pltpu

LANES = 128  # all channel dims are zero-padded to one full lane width


def _full_spec(shape):
    # Whole-array block (no grid); last two dims equal the full array dims,
    # which satisfies the (8,128) tiling rule.
    return pl.BlockSpec(shape, lambda: (0,) * len(shape))


def _make_kernel(B, L, n_conv, n_fc):
    N = B * L

    def kernel(x_ref, convw_ref, fcw_ref, vec_ref, alphas_ref, o_ref):
        # Per-row sequence-position masks, built once and reused by every conv
        # layer: a row only has a valid l-1 / l+1 neighbour inside its own
        # length-L sequence (this also kills pltpu.roll's array wraparound).
        row = lax.broadcasted_iota(jnp.int32, (N, LANES), 0)
        pos = row % L
        left_ok = pos != 0          # l-1 exists
        right_ok = pos != (L - 1)   # l+1 exists

        h = x_ref[...]              # (B*L, 128) f32, channels on lanes (zero-padded)
        a_i = 0
        for i in range(n_conv):
            # Neighbours via XLU sublane roll; sequence edges zeroed by the mask.
            h_left = jnp.where(left_ok, pltpu.roll(h, 1, 0), 0.0)        # x[l-1]
            h_right = jnp.where(right_ok, pltpu.roll(h, N - 1, 0), 0.0)  # x[l+1]
            # Fused 3-tap conv: one deep-contraction matmul per layer.
            h_pack = jnp.concatenate([h_left, h, h_right], axis=-1)      # (N, 3*128)
            y = jnp.dot(h_pack, convw_ref[i], preferred_element_type=jnp.float32)
            y = y + vec_ref[pl.ds(i, 1), :]       # folded conv-bias + BN shift
            a = alphas_ref[a_i]
            a_i += 1
            h = jnp.where(y > 0, y, a * y)        # PReLU (single shared alpha)

        # permute + global max over sequence positions -> (B, 128), lanes stay dense.
        # (L is a multiple of 8 here, so the reshape stays relayout-free.)
        z = jnp.max(h.reshape(B, L, LANES), axis=1)

        # FC stack 128->64->32->16->8->4->2->1, every layer zero-padded to 128
        # lanes (Dropout == identity in eval).
        for j in range(n_fc):
            z = jnp.dot(z, fcw_ref[j], preferred_element_type=jnp.float32)
            z = z + vec_ref[pl.ds(n_conv + j, 1), :]
            if j < n_fc - 1:
                a = alphas_ref[a_i]
                a_i += 1
                z = jnp.where(z > 0, z, a * z)
        o_ref[...] = z               # lane 0 holds the real logit; rest are exact zeros

    return kernel


def rnaseq_classifier_forward(x_ncl, conv_params, fc_params):
    """Fused forward. x_ncl: (B, Cin, L) float32 (PyTorch Conv1d NCL layout)."""
    B, Cin, L = x_ncl.shape
    N = B * L
    n_conv, n_fc = len(conv_params), len(fc_params)

    # Tiny layout op outside the kernel: NCL -> (B*L, Cin) -> pad channels to 128 lanes.
    x2d = jnp.transpose(x_ncl, (0, 2, 1)).reshape(N, Cin).astype(jnp.float32)
    x2d = jnp.pad(x2d, ((0, 0), (0, LANES - Cin)))

    # ---- Pack parameters into a few lane-dense slabs (few big DMAs, not ~16 tiny ones) ----
    n_vec_rows = max(8, ((n_conv + n_fc + 7) // 8) * 8)
    vec = jnp.zeros((n_vec_rows, LANES), jnp.float32)   # conv shifts (rows 0..2) + FC biases
    alphas = []

    conv_slabs = []
    for i, (w, scale, shift, a) in enumerate(conv_params):
        _, cin, cout = w.shape
        ws = (w * scale).astype(jnp.float32)            # fold BN scale into the 3 taps
        slab = jnp.zeros((3, LANES, LANES), jnp.float32).at[:, :cin, :cout].set(ws)
        conv_slabs.append(slab.reshape(3 * LANES, LANES))   # tap-major rows match concat order
        vec = vec.at[i, :cout].set(shift.reshape(-1).astype(jnp.float32))
        alphas.append(a)
    convw = jnp.stack(conv_slabs)                        # (n_conv, 384, 128)

    fc_slabs = []
    for j, (w, b, a) in enumerate(fc_params):
        di, do = w.shape
        fc_slabs.append(jnp.zeros((LANES, LANES), jnp.float32).at[:di, :do].set(w))
        vec = vec.at[n_conv + j, :do].set(b.reshape(-1).astype(jnp.float32))
        if a is not None:
            alphas.append(a)
    fcw = jnp.stack(fc_slabs)                            # (n_fc, 128, 128)
    alphas_arr = jnp.concatenate(alphas).astype(jnp.float32)   # (9,) PReLU slopes -> SMEM

    kernel = _make_kernel(B, L, n_conv, n_fc)

    # TODO(synk): at B=2/L=16 a single un-gridded call is optimal; for large B*L
    # add a batch grid with dimension_semantics=("parallel",), give the weight
    # slabs constant index_maps (stay VMEM-resident), and re-derive the VMEM
    # budget against v7x's 64 MiB.
    out = pl.pallas_call(
        kernel,
        out_shape=jax.ShapeDtypeStruct((B, LANES), jnp.float32),
        in_specs=[
            _full_spec(x2d.shape),
            _full_spec(convw.shape),
            _full_spec(fcw.shape),
            _full_spec(vec.shape),
            pl.BlockSpec(memory_space=pltpu.MemorySpace.SMEM),
        ],
        out_specs=_full_spec((B, LANES)),
    )(x2d, convw, fcw, vec, alphas_arr)
    return out[:, :1]                                    # (B, 1) logit from lane 0


def init_params(key, in_channels=4, num_layers=3, num_heads=4):
    base = num_heads * 8
    channels = [in_channels] + [base * 2 ** i for i in range(num_layers)]  # [4,32,64,128]
    eps = 1e-5
    conv_params = []
    for i in range(num_layers):
        cin, cout = channels[i], channels[i + 1]
        key, *ks = jax.random.split(key, 7)
        w = 0.1 * jax.random.normal(ks[0], (3, cin, cout), jnp.float32)
        bias = 0.1 * jax.random.normal(ks[1], (cout,), jnp.float32)
        gamma = 1.0 + 0.1 * jax.random.normal(ks[2], (cout,), jnp.float32)
        beta = 0.1 * jax.random.normal(ks[3], (cout,), jnp.float32)
        mean = 0.1 * jax.random.normal(ks[4], (cout,), jnp.float32)
        var = 0.5 + 0.5 * jnp.abs(jax.random.normal(ks[5], (cout,), jnp.float32))
        s = gamma / jnp.sqrt(var + eps)                       # fold BN (eval mode)
        scale = s.reshape(1, cout)
        shift = ((bias - mean) * s + beta).reshape(1, cout)
        alpha = jnp.array([0.25], jnp.float32)                # PReLU default init
        conv_params.append((w, scale, shift, alpha))

    # FC stack: 128 -> 64 -> 32 -> 16 -> 8 -> 4 -> 2, then Linear(2 -> 1)
    dims = []
    in_f = channels[-1]
    cur = in_f // 2
    while cur >= 2:
        dims.append((in_f, cur))
        in_f = cur
        cur //= 2
    dims.append((in_f, 1))
    fc_params = []
    for j, (di, do) in enumerate(dims):
        key, kw, kb = jax.random.split(key, 3)
        w = 0.1 * jax.random.normal(kw, (di, do), jnp.float32)
        b = 0.1 * jax.random.normal(kb, (1, do), jnp.float32)
        a = jnp.array([0.25], jnp.float32) if j < len(dims) - 1 else None
        fc_params.append((w, b, a))
    return conv_params, fc_params


def reference_forward(x_ncl, conv_params, fc_params):
    """Pure-JAX reference for correctness checking."""
    x = jnp.transpose(x_ncl, (0, 2, 1))
    for (w, sc, sh, a) in conv_params:
        K = w.shape[0]
        L = x.shape[1]
        xp = jnp.pad(x, ((0, 0), (K // 2, K // 2), (0, 0)))
        y = sum(jnp.einsum('blc,cd->bld', xp[:, k:k + L, :], w[k]) for k in range(K))
        y = y * sc + sh
        x = jnp.where(y > 0, y, a[0] * y)
    h = jnp.max(x, axis=1)
    for (w, b, a) in fc_params:
        h = h @ w + b
        if a is not None:
            h = jnp.where(h > 0, h, a[0] * h)
    return h


if __name__ == "__main__":
    key = jax.random.PRNGKey(0)
    key, kx = jax.random.split(key)
    B, C_in, L = 2, 4, 16
    x = jax.random.normal(kx, (B, C_in, L), jnp.float32)   # PyTorch NCL input layout

    conv_params, fc_params = init_params(key)

    fwd = jax.jit(rnaseq_classifier_forward)
    out = fwd(x, conv_params, fc_params)
    out = jax.block_until_ready(out)

    ref = reference_forward(x, conv_params, fc_params)
    assert out.shape == (B, 1)
    assert jnp.allclose(out, ref, atol=1e-4, rtol=1e-4), (out, ref)
    # TODO(synk): Dropout omitted (identity in inference); BatchNorm uses running
    # stats (eval mode) folded into the conv weight slab + per-channel shift.
    print("KERNEL_OK")
</pallas_src>

<mosaic_0001>
module attributes {stable_mosaic.version = 11 : i64} {
  func.func @kernel(%arg0: memref<32x128xf32, #tpu.memory_space<vmem>>, %arg1: memref<3x384x128xf32, #tpu.memory_space<vmem>>, %arg2: memref<7x128x128xf32, #tpu.memory_space<vmem>>, %arg3: memref<16x128xf32, #tpu.memory_space<vmem>>, %arg4: memref<9xf32, #tpu.memory_space<smem>>, %arg5: memref<2x128xf32, #tpu.memory_space<vmem>>) attributes {dimension_semantics = [], scalar_prefetch = 0 : i64, scratch_operands = 0 : i64, tpu.core_type = #tpu.core_type<tc>} {
    %0 = tpu.iota {dimensions = array<i32: 0>} : vector<32x128xi32>
    %c16_i32 = arith.constant 16 : i32
    %c0_i32 = arith.constant 0 : i32
    %1 = arith.cmpi eq, %c16_i32, %c0_i32 : i32
    %c1_i32 = arith.constant 1 : i32
    %2 = arith.select %1, %c1_i32, %c16_i32 : i32
    %3 = vector.broadcast %2 : i32 to vector<32x128xi32>
    %4 = arith.remsi %0, %3 : vector<32x128xi32>
    %c0_i32_0 = arith.constant 0 : i32
    %5 = vector.broadcast %c0_i32_0 : i32 to vector<32x128xi32>
    %6 = arith.cmpi ne, %4, %5 : vector<32x128xi32>
    %c0_i32_1 = arith.constant 0 : i32
    %7 = vector.broadcast %c0_i32_1 : i32 to vector<32x128xi32>
    %8 = arith.cmpi slt, %4, %7 : vector<32x128xi32>
    %c0_i32_2 = arith.constant 0 : i32
    %9 = arith.cmpi slt, %2, %c0_i32_2 : i32
    %10 = vector.broadcast %9 : i1 to vector<32x128xi1>
    %11 = vector.broadcast %10 : vector<32x128xi1> to vector<32x128xi1>
    %12 = arith.xori %8, %11 : vector<32x128xi1>
    %13 = arith.andi %12, %6 : vector<32x128xi1>
    %14 = vector.broadcast %2 : i32 to vector<32x128xi32>
    %15 = arith.addi %4, %14 : vector<32x128xi32>
    %16 = arith.select %13, %15, %4 : vector<32x128xi1>, vector<32x128xi32>
    %c0_i32_3 = arith.constant 0 : i32
    %17 = vector.broadcast %c0_i32_3 : i32 to vector<32x128xi32>
    %18 = arith.cmpi ne, %16, %17 : vector<32x128xi32>
    %c15_i32 = arith.constant 15 : i32
    %19 = vector.broadcast %c15_i32 : i32 to vector<32x128xi32>
    %20 = arith.cmpi ne, %16, %19 : vector<32x128xi32>
    %c0 = arith.constant 0 : index
    %c0_4 = arith.constant 0 : index
    %21 = vector.load %arg0[%c0, %c0_4] : memref<32x128xf32, #tpu.memory_space<vmem>>, vector<32x128xf32>
    %c1_i32_5 = arith.constant 1 : i32
    %22 = tpu.dynamic_rotate %21 by %c1_i32_5 dim 0 : vector<32x128xf32>, i32 -> vector<32x128xf32>
    %cst = arith.constant 0.000000e+00 : f32
    %23 = vector.broadcast %cst : f32 to vector<32x128xf32>
    %24 = arith.select %18, %22, %23 : vector<32x128xi1>, vector<32x128xf32>
    %c31_i32 = arith.constant 31 : i32
    %25 = tpu.dynamic_rotate %21 by %c31_i32 dim 0 : vector<32x128xf32>, i32 -> vector<32x128xf32>
    %cst_6 = arith.constant 0.000000e+00 : f32
    %26 = vector.broadcast %cst_6 : f32 to vector<32x128xf32>
    %27 = arith.select %20, %25, %26 : vector<32x128xi1>, vector<32x128xf32>
    %28 = tpu.concatenate %24, %21, %27 in 1 : vector<32x128xf32>, vector<32x128xf32>, vector<32x128xf32> -> vector<32x384xf32>
    %c0_7 = arith.constant 0 : index
    %c0_8 = arith.constant 0 : index
    %c0_9 = arith.constant 0 : index
    %29 = vector.load %arg1[%c0_7, %c0_8, %c0_9] : memref<3x384x128xf32, #tpu.memory_space<vmem>>, vector<1x384x128xf32>
    %30 = vector.shape_cast %29 : vector<1x384x128xf32> to vector<384x128xf32>
    %cst_10 = arith.constant dense<0.000000e+00> : vector<32x128xf32>
    %31 = tpu.matmul %28, %30, %cst_10 {dimension_numbers = #tpu.dot_dimension_numbers<[1], [0], [0], [1], [0, 0, 1, 1], [], []>} : vector<32x384xf32>, vector<384x128xf32>, vector<32x128xf32> -> vector<32x128xf32>
    %c0_11 = arith.constant 0 : index
    %c0_12 = arith.constant 0 : index
    %32 = vector.load %arg3[%c0_11, %c0_12] : memref<16x128xf32, #tpu.memory_space<vmem>>, vector<1x128xf32>
    %33 = vector.broadcast %32 : vector<1x128xf32> to vector<32x128xf32>
    %34 = arith.addf %31, %33 : vector<32x128xf32>
    %c0_13 = arith.constant 0 : index
    %35 = memref.load %arg4[%c0_13] : memref<9xf32, #tpu.memory_space<smem>>
    %cst_14 = arith.constant 0.000000e+00 : f32
    %36 = vector.broadcast %cst_14 : f32 to vector<32x128xf32>
    %37 = arith.cmpf ogt, %34, %36 : vector<32x128xf32>
    %38 = vector.broadcast %35 : f32 to vector<32x128xf32>
    %39 = arith.mulf %38, %34 : vector<32x128xf32>
    %40 = arith.select %37, %34, %39 : vector<32x128xi1>, vector<32x128xf32>
    %c1_i32_15 = arith.constant 1 : i32
    %41 = tpu.dynamic_rotate %40 by %c1_i32_15 dim 0 : vector<32x128xf32>, i32 -> vector<32x128xf32>
    %cst_16 = arith.constant 0.000000e+00 : f32
    %42 = vector.broadcast %cst_16 : f32 to vector<32x128xf32>
    %43 = arith.select %18, %41, %42 : vector<32x128xi1>, vector<32x128xf32>
    %c31_i32_17 = arith.constant 31 : i32
    %44 = tpu.dynamic_rotate %40 by %c31_i32_17 dim 0 : vector<32x128xf32>, i32 -> vector<32x128xf32>
    %cst_18 = arith.constant 0.000000e+00 : f32
    %45 = vector.broadcast %cst_18 : f32 to vector<32x128xf32>
    %46 = arith.select %20, %44, %45 : vector<32x128xi1>, vector<32x128xf32>
    %47 = tpu.concatenate %43, %40, %46 in 1 : vector<32x128xf32>, vector<32x128xf32>, vector<32x128xf32> -> vector<32x384xf32>
    %c1 = arith.constant 1 : index
    %c0_19 = arith.constant 0 : index
    %c0_20 = arith.constant 0 : index
    %48 = vector.load %arg1[%c1, %c0_19, %c0_20] : memref<3x384x128xf32, #tpu.memory_space<vmem>>, vector<1x384x128xf32>
    %49 = vector.shape_cast %48 : vector<1x384x128xf32> to vector<384x128xf32>
    %cst_21 = arith.constant dense<0.000000e+00> : vector<32x128xf32>
    %50 = tpu.matmul %47, %49, %cst_21 {dimension_numbers = #tpu.dot_dimension_numbers<[1], [0], [0], [1], [0, 0, 1, 1], [], []>} : vector<32x384xf32>, vector<384x128xf32>, vector<32x128xf32> -> vector<32x128xf32>
    %c1_22 = arith.constant 1 : index
    %c0_23 = arith.constant 0 : index
    %51 = vector.load %arg3[%c1_22, %c0_23] : memref<16x128xf32, #tpu.memory_space<vmem>>, vector<1x128xf32>
    %52 = vector.broadcast %51 : vector<1x128xf32> to vector<32x128xf32>
    %53 = arith.addf %50, %52 : vector<32x128xf32>
    %c1_24 = arith.constant 1 : index
    %54 = memref.load %arg4[%c1_24] : memref<9xf32, #tpu.memory_space<smem>>
    %cst_25 = arith.constant 0.000000e+00 : f32
    %55 = vector.broadcast %cst_25 : f32 to vector<32x128xf32>
    %56 = arith.cmpf ogt, %53, %55 : vector<32x128xf32>
    %57 = vector.broadcast %54 : f32 to vector<32x128xf32>
    %58 = arith.mulf %57, %53 : vector<32x128xf32>
    %59 = arith.select %56, %53, %58 : vector<32x128xi1>, vector<32x128xf32>
    %c1_i32_26 = arith.constant 1 : i32
    %60 = tpu.dynamic_rotate %59 by %c1_i32_26 dim 0 : vector<32x128xf32>, i32 -> vector<32x128xf32>
    %cst_27 = arith.constant 0.000000e+00 : f32
    %61 = vector.broadcast %cst_27 : f32 to vector<32x128xf32>
    %62 = arith.select %18, %60, %61 : vector<32x128xi1>, vector<32x128xf32>
    %c31_i32_28 = arith.constant 31 : i32
    %63 = tpu.dynamic_rotate %59 by %c31_i32_28 dim 0 : vector<32x128xf32>, i32 -> vector<32x128xf32>
    %cst_29 = arith.constant 0.000000e+00 : f32
    %64 = vector.broadcast %cst_29 : f32 to vector<32x128xf32>
    %65 = arith.select %20, %63, %64 : vector<32x128xi1>, vector<32x128xf32>
    %66 = tpu.concatenate %62, %59, %65 in 1 : vector<32x128xf32>, vector<32x128xf32>, vector<32x128xf32> -> vector<32x384xf32>
    %c2 = arith.constant 2 : index
    %c0_30 = arith.constant 0 : index
    %c0_31 = arith.constant 0 : index
    %67 = vector.load %arg1[%c2, %c0_30, %c0_31] : memref<3x384x128xf32, #tpu.memory_space<vmem>>, vector<1x384x128xf32>
    %68 = vector.shape_cast %67 : vector<1x384x128xf32> to vector<384x128xf32>
    %cst_32 = arith.constant dense<0.000000e+00> : vector<32x128xf32>
    %69 = tpu.matmul %66, %68, %cst_32 {dimension_numbers = #tpu.dot_dimension_numbers<[1], [0], [0], [1], [0, 0, 1, 1], [], []>} : vector<32x384xf32>, vector<384x128xf32>, vector<32x128xf32> -> vector<32x128xf32>
    %c2_33 = arith.constant 2 : index
    %c0_34 = arith.constant 0 : index
    %70 = vector.load %arg3[%c2_33, %c0_34] : memref<16x128xf32, #tpu.memory_space<vmem>>, vector<1x128xf32>
    %71 = vector.broadcast %70 : vector<1x128xf32> to vector<32x128xf32>
    %72 = arith.addf %69, %71 : vector<32x128xf32>
    %c2_35 = arith.constant 2 : index
    %73 = memref.load %arg4[%c2_35] : memref<9xf32, #tpu.memory_space<smem>>
    %cst_36 = arith.constant 0.000000e+00 : f32
    %74 = vector.broadcast %cst_36 : f32 to vector<32x128xf32>
    %75 = arith.cmpf ogt, %72, %74 : vector<32x128xf32>
    %76 = vector.broadcast %73 : f32 to vector<32x128xf32>
    %77 = arith.mulf %76, %72 : vector<32x128xf32>
    %78 = arith.select %75, %72, %77 : vector<32x128xi1>, vector<32x128xf32>
    %79 = vector.shape_cast %78 : vector<32x128xf32> to vector<2x16x128xf32>
    %cst_37 = arith.constant dense<0xFF800000> : vector<2x128xf32>
    %80 = vector.multi_reduction <maximumf>, %79, %cst_37 [1] : vector<2x16x128xf32> to vector<2x128xf32>
    %c0_38 = arith.constant 0 : index
    %c0_39 = arith.constant 0 : index
    %c0_40 = arith.constant 0 : index
    %81 = vector.load %arg2[%c0_38, %c0_39, %c0_40] : memref<7x128x128xf32, #tpu.memory_space<vmem>>, vector<1x128x128xf32>
    %82 = vector.shape_cast %81 : vector<1x128x128xf32> to vector<128x128xf32>
    %cst_41 = arith.constant dense<0.000000e+00> : vector<2x128xf32>
    %83 = tpu.matmul %80, %82, %cst_41 {dimension_numbers = #tpu.dot_dimension_numbers<[1], [0], [0], [1], [0, 0, 1, 1], [], []>} : vector<2x128xf32>, vector<128x128xf32>, vector<2x128xf32> -> vector<2x128xf32>
    %c3 = arith.constant 3 : index
    %c0_42 = arith.constant 0 : index
    %84 = vector.load %arg3[%c3, %c0_42] : memref<16x128xf32, #tpu.memory_space<vmem>>, vector<1x128xf32>
    %85 = vector.broadcast %84 : vector<1x128xf32> to vector<2x128xf32>
    %86 = arith.addf %83, %85 : vector<2x128xf32>
    %c3_43 = arith.constant 3 : index
    %87 = memref.load %arg4[%c3_43] : memref<9xf32, #tpu.memory_space<smem>>
    %cst_44 = arith.constant 0.000000e+00 : f32
    %88 = vector.broadcast %cst_44 : f32 to vector<2x128xf32>
    %89 = arith.cmpf ogt, %86, %88 : vector<2x128xf32>
    %90 = vector.broadcast %87 : f32 to vector<2x128xf32>
    %91 = arith.mulf %90, %86 : vector<2x128xf32>
    %92 = arith.select %89, %86, %91 : vector<2x128xi1>, vector<2x128xf32>
    %c1_45 = arith.constant 1 : index
    %c0_46 = arith.constant 0 : index
    %c0_47 = arith.constant 0 : index
    %93 = vector.load %arg2[%c1_45, %c0_46, %c0_47] : memref<7x128x128xf32, #tpu.memory_space<vmem>>, vector<1x128x128xf32>
    %94 = vector.shape_cast %93 : vector<1x128x128xf32> to vector<128x128xf32>
    %cst_48 = arith.constant dense<0.000000e+00> : vector<2x128xf32>
    %95 = tpu.matmul %92, %94, %cst_48 {dimension_numbers = #tpu.dot_dimension_numbers<[1], [0], [0], [1], [0, 0, 1, 1], [], []>} : vector<2x128xf32>, vector<128x128xf32>, vector<2x128xf32> -> vector<2x128xf32>
    %c4 = arith.constant 4 : index
    %c0_49 = arith.constant 0 : index
    %96 = vector.load %arg3[%c4, %c0_49] : memref<16x128xf32, #tpu.memory_space<vmem>>, vector<1x128xf32>
    %97 = vector.broadcast %96 : vector<1x128xf32> to vector<2x128xf32>
    %98 = arith.addf %95, %97 : vector<2x128xf32>
    %c4_50 = arith.constant 4 : index
    %99 = memref.load %arg4[%c4_50] : memref<9xf32, #tpu.memory_space<smem>>
    %cst_51 = arith.constant 0.000000e+00 : f32
    %100 = vector.broadcast %cst_51 : f32 to vector<2x128xf32>
    %101 = arith.cmpf ogt, %98, %100 : vector<2x128xf32>
    %102 = vector.broadcast %99 : f32 to vector<2x128xf32>
    %103 = arith.mulf %102, %98 : vector<2x128xf32>
    %104 = arith.select %101, %98, %103 : vector<2x128xi1>, vector<2x128xf32>
    %c2_52 = arith.constant 2 : index
    %c0_53 = arith.constant 0 : index
    %c0_54 = arith.constant 0 : index
    %105 = vector.load %arg2[%c2_52, %c0_53, %c0_54] : memref<7x128x128xf32, #tpu.memory_space<vmem>>, vector<1x128x128xf32>
    %106 = vector.shape_cast %105 : vector<1x128x128xf32> to vector<128x128xf32>
    %cst_55 = arith.constant dense<0.000000e+00> : vector<2x128xf32>
    %107 = tpu.matmul %104, %106, %cst_55 {dimension_numbers = #tpu.dot_dimension_numbers<[1], [0], [0], [1], [0, 0, 1, 1], [], []>} : vector<2x128xf32>, vector<128x128xf32>, vector<2x128xf32> -> vector<2x128xf32>
    %c5 = arith.constant 5 : index
    %c0_56 = arith.constant 0 : index
    %108 = vector.load %arg3[%c5, %c0_56] : memref<16x128xf32, #tpu.memory_space<vmem>>, vector<1x128xf32>
    %109 = vector.broadcast %108 : vector<1x128xf32> to vector<2x128xf32>
    %110 = arith.addf %107, %109 : vector<2x128xf32>
    %c5_57 = arith.constant 5 : index
    %111 = memref.load %arg4[%c5_57] : memref<9xf32, #tpu.memory_space<smem>>
    %cst_58 = arith.constant 0.000000e+00 : f32
    %112 = vector.broadcast %cst_58 : f32 to vector<2x128xf32>
    %113 = arith.cmpf ogt, %110, %112 : vector<2x128xf32>
    %114 = vector.broadcast %111 : f32 to vector<2x128xf32>
    %115 = arith.mulf %114, %110 : vector<2x128xf32>
    %116 = arith.select %113, %110, %115 : vector<2x128xi1>, vector<2x128xf32>
    %c3_59 = arith.constant 3 : index
    %c0_60 = arith.constant 0 : index
    %c0_61 = arith.constant 0 : index
    %117 = vector.load %arg2[%c3_59, %c0_60, %c0_61] : memref<7x128x128xf32, #tpu.memory_space<vmem>>, vector<1x128x128xf32>
    %118 = vector.shape_cast %117 : vector<1x128x128xf32> to vector<128x128xf32>
    %cst_62 = arith.constant dense<0.000000e+00> : vector<2x128xf32>
    %119 = tpu.matmul %116, %118, %cst_62 {dimension_numbers = #tpu.dot_dimension_numbers<[1], [0], [0], [1], [0, 0, 1, 1], [], []>} : vector<2x128xf32>, vector<128x128xf32>, vector<2x128xf32> -> vector<2x128xf32>
    %c6 = arith.constant 6 : index
    %c0_63 = arith.constant 0 : index
    %120 = vector.load %arg3[%c6, %c0_63] : memref<16x128xf32, #tpu.memory_space<vmem>>, vector<1x128xf32>
    %121 = vector.broadcast %120 : vector<1x128xf32> to vector<2x128xf32>
    %122 = arith.addf %119, %121 : vector<2x128xf32>
    %c6_64 = arith.constant 6 : index
    %123 = memref.load %arg4[%c6_64] : memref<9xf32, #tpu.memory_space<smem>>
    %cst_65 = arith.constant 0.000000e+00 : f32
    %124 = vector.broadcast %cst_65 : f32 to vector<2x128xf32>
    %125 = arith.cmpf ogt, %122, %124 : vector<2x128xf32>
    %126 = vector.broadcast %123 : f32 to vector<2x128xf32>
    %127 = arith.mulf %126, %122 : vector<2x128xf32>
    %128 = arith.select %125, %122, %127 : vector<2x128xi1>, vector<2x128xf32>
    %c4_66 = arith.constant 4 : index
    %c0_67 = arith.constant 0 : index
    %c0_68 = arith.constant 0 : index
    %129 = vector.load %arg2[%c4_66, %c0_67, %c0_68] : memref<7x128x128xf32, #tpu.memory_space<vmem>>, vector<1x128x128xf32>
    %130 = vector.shape_cast %129 : vector<1x128x128xf32> to vector<128x128xf32>
    %cst_69 = arith.constant dense<0.000000e+00> : vector<2x128xf32>
    %131 = tpu.matmul %128, %130, %cst_69 {dimension_numbers = #tpu.dot_dimension_numbers<[1], [0], [0], [1], [0, 0, 1, 1], [], []>} : vector<2x128xf32>, vector<128x128xf32>, vector<2x128xf32> -> vector<2x128xf32>
    %c7 = arith.constant 7 : index
    %c0_70 = arith.constant 0 : index
    %132 = vector.load %arg3[%c7, %c0_70] : memref<16x128xf32, #tpu.memory_space<vmem>>, vector<1x128xf32>
    %133 = vector.broadcast %132 : vector<1x128xf32> to vector<2x128xf32>
    %134 = arith.addf %131, %133 : vector<2x128xf32>
    %c7_71 = arith.constant 7 : index
    %135 = memref.load %arg4[%c7_71] : memref<9xf32, #tpu.memory_space<smem>>
    %cst_72 = arith.constant 0.000000e+00 : f32
    %136 = vector.broadcast %cst_72 : f32 to vector<2x128xf32>
    %137 = arith.cmpf ogt, %134, %136 : vector<2x128xf32>
    %138 = vector.broadcast %135 : f32 to vector<2x128xf32>
    %139 = arith.mulf %138, %134 : vector<2x128xf32>
    %140 = arith.select %137, %134, %139 : vector<2x128xi1>, vector<2x128xf32>
    %c5_73 = arith.constant 5 : index
    %c0_74 = arith.constant 0 : index
    %c0_75 = arith.constant 0 : index
    %141 = vector.load %arg2[%c5_73, %c0_74, %c0_75] : memref<7x128x128xf32, #tpu.memory_space<vmem>>, vector<1x128x128xf32>
    %142 = vector.shape_cast %141 : vector<1x128x128xf32> to vector<128x128xf32>
    %cst_76 = arith.constant dense<0.000000e+00> : vector<2x128xf32>
    %143 = tpu.matmul %140, %142, %cst_76 {dimension_numbers = #tpu.dot_dimension_numbers<[1], [0], [0], [1], [0, 0, 1, 1], [], []>} : vector<2x128xf32>, vector<128x128xf32>, vector<2x128xf32> -> vector<2x128xf32>
    %c8 = arith.constant 8 : index
    %c0_77 = arith.constant 0 : index
    %144 = vector.load %arg3[%c8, %c0_77] : memref<16x128xf32, #tpu.memory_space<vmem>>, vector<1x128xf32>
    %145 = vector.broadcast %144 : vector<1x128xf32> to vector<2x128xf32>
    %146 = arith.addf %143, %145 : vector<2x128xf32>
    %c8_78 = arith.constant 8 : index
    %147 = memref.load %arg4[%c8_78] : memref<9xf32, #tpu.memory_space<smem>>
    %cst_79 = arith.constant 0.000000e+00 : f32
    %148 = vector.broadcast %cst_79 : f32 to vector<2x128xf32>
    %149 = arith.cmpf ogt, %146, %148 : vector<2x128xf32>
    %150 = vector.broadcast %147 : f32 to vector<2x128xf32>
    %151 = arith.mulf %150, %146 : vector<2x128xf32>
    %152 = arith.select %149, %146, %151 : vector<2x128xi1>, vector<2x128xf32>
    %c6_80 = arith.constant 6 : index
    %c0_81 = arith.constant 0 : index
    %c0_82 = arith.constant 0 : index
    %153 = vector.load %arg2[%c6_80, %c0_81, %c0_82] : memref<7x128x128xf32, #tpu.memory_space<vmem>>, vector<1x128x128xf32>
    %154 = vector.shape_cast %153 : vector<1x128x128xf32> to vector<128x128xf32>
    %cst_83 = arith.constant dense<0.000000e+00> : vector<2x128xf32>
    %155 = tpu.matmul %152, %154, %cst_83 {dimension_numbers = #tpu.dot_dimension_numbers<[1], [0], [0], [1], [0, 0, 1, 1], [], []>} : vector<2x128xf32>, vector<128x128xf32>, vector<2x128xf32> -> vector<2x128xf32>
    %c9 = arith.constant 9 : index
    %c0_84 = arith.constant 0 : index
    %156 = vector.load %arg3[%c9, %c0_84] : memref<16x128xf32, #tpu.memory_space<vmem>>, vector<1x128xf32>
    %157 = vector.broadcast %156 : vector<1x128xf32> to vector<2x128xf32>
    %158 = arith.addf %155, %157 : vector<2x128xf32>
    %c0_85 = arith.constant 0 : index
    %c0_86 = arith.constant 0 : index
    %159 = vector.load %arg5[%c0_85, %c0_86] : memref<2x128xf32, #tpu.memory_space<vmem>>, vector<2x128xf32>
    tpu.vector_store %arg5[%c0_85, %c0_86], %158 {strides = array<i32>} : memref<2x128xf32, #tpu.memory_space<vmem>>, vector<2x128xf32>,
    return
  }
}

</mosaic_0001>

<bundles_post_ra>
// kernel: rnaseq_classifier_forward.1
= control target key start
LH: loop header
LB: loop body
LE: loop exit
PB: predicated region body
PF: predicated region fallthrough
CT: control target
= control target key end

     0   :  { %10 = vsyncpa [#allocation3], 0  ;;  %s3587_s0 = inlined_call_operand.vmem [shape: f32[32,128], index: 0, kind: input, shape index: {}]   ;;  %s3588_s1 = inlined_call_operand.vmem [shape: f32[3,384,128], index: 1, kind: input, shape index: {}]   ;;  %s3589_s2 = inlined_call_operand.vmem [shape: f32[7,128,128], index: 2, kind: input, shape index: {}]   ;;  %s3590_s3 = inlined_call_operand.vmem [shape: f32[16,128], index: 3, kind: input, shape index: {}]   ;;  %s3591_s4 = inlined_call_operand.vmem [shape: f32[9], index: 4, kind: input, shape index: {}]   ;;  %s3592_s5 = inlined_call_operand.vmem [shape: f32[2,128], index: 5, kind: output, shape index: {}]  }
   0x1   :  { %s25_s20 = sshll.u32 %s3591_s4, 4  ;;  %s26_s20 = int_to_ptr.vmem [resolvable:$true] %s25_s20 }
   0x2   :  { %s2478_s21 = scalar_lea.vmem %s26_s20, 16  ;;  %p2483_p1 = scmp.lt.s32.totalorder %s26_s20, %s26_s20 }
   0x3   :  { %p2479_p0 = scmp.ne.s32.totalorder %s26_s20, %s2478_s21  ;;  %p2484_p2 = scmp.lt.s32.totalorder %s2478_s21, %s2478_s21 }
   0x5   :  { %p2485_p3 = por %p2484_p2, %p2483_p1 }
   0x7   :  { %p2486_p4 = pnand %p2485_p3, %p2479_p0 }
   0x9   :  { %2489 = shalt.err (!%p2486_p4)
}
   0xa   :  { %s2492_s22 = smov [#allocation2]  }
   0xb   :  { %28 = dma.vmem_to_smem %s26_s20, 16, %s2492_s22, [#allocation3]  }
   0xc   :  { %2490 = dma.done.wait [#allocation3], 16  }
   0xd   :  { %2491 = vsyncadd [#allocation3], 4294967280 }
   0xe   :  { %32 = sfence }
   0xf   :  { %v155_v0 = vld [vmem:[%s3588_s1 + $0xf8] sm:$0xff]  ;;  %v154_v2 = vld [vmem:[%s3588_s1 + $0xf0] sm:$0xff]  ;;  %v153_v5 = vld [vmem:[%s3588_s1 + $0xe8] sm:$0xff]  ;;  %v33_v31 = vlaneseq  ;;  %s347_s15 = sld [smem:[#allocation2]]  ;;  %vm2494_vm14 = vmmov 0  }
  0x10   :  { %v139_v1 = vld [vmem:[%s3588_s1 + $0x78] sm:$0xff]  ;;  %1805 = vmatprep.subr.mxu0 %v155_v0  ;;  %v138_v3 = vld [vmem:[%s3588_s1 + $0x70] sm:$0xff]  ;;  %v137_v7 = vld [vmem:[%s3588_s1 + $0x68] sm:$0xff]  ;;  %s1641_s27 = sld [smem:[#allocation2 + $0x1]] }
  0x11   :  { %v171_v4 = vld [vmem:[%s3588_s1 + $0x178] sm:$0xff]  ;;  %1806 = vmatpush3.msra.mxu0 %v139_v1  ;;  %v170_v6 = vld [vmem:[%s3588_s1 + $0x170] sm:$0xff]  ;;  %v169_v8 = vld [vmem:[%s3588_s1 + $0x168] sm:$0xff]  ;;  %v2642_v39 = vshrl.u32 %v33_v31, 7  ;;  %s1695_s6 = sld [smem:[#allocation2 + $0x2]] }
  0x12   :  { %2116 = vmatprep.subr.mxu1 %v171_v4  ;;  %1807 = vmatprep.subr.mxu0 %v154_v2  ;;  %v152_v9 = vld [vmem:[%s3588_s1 + $0xe0] sm:$0xff]  ;;  %v151_v12 = vld [vmem:[%s3588_s1 + $0xd8] sm:$0xff]  ;;  %v150_v15 = vld [vmem:[%s3588_s1 + $0xd0] sm:$0xff]  ;;  %s1697_s13 = sld [smem:[#allocation2 + $0x3]] }
  0x13   :  { %2117 = vmatpush3.msra.mxu1 %v171_v4  ;;  %1808 = vmatpush3.msra.mxu0 %v138_v3  ;;  %v136_v10 = vld [vmem:[%s3588_s1 + $0x60] sm:$0xff]  ;;  %v135_v13 = vld [vmem:[%s3588_s1 + $0x58] sm:$0xff]  ;;  %v134_v16 = vld [vmem:[%s3588_s1 + $0x50] sm:$0xff]  ;;  %v35_v47 = vadd.s32 8, %v2642_v39  ;;  %v42_v50 = vand.u32 15, %v2642_v39  ;;  %vm102_vm0 = vcmp.lt.s32.totalorder %v2642_v39, 1 }
  0x14   :  { %2118 = vmatprep.subr.mxu1 %v170_v6  ;;  %1809 = vmatprep.subr.mxu0 %v153_v5  ;;  %v168_v11 = vld [vmem:[%s3588_s1 + $0x160] sm:$0xff]  ;;  %v167_v14 = vld [vmem:[%s3588_s1 + $0x158] sm:$0xff]  ;;  %v166_v17 = vld [vmem:[%s3588_s1 + $0x150] sm:$0xff]  ;;  %vm115_vm1 = vcmp.lt.s32.totalorder %v2642_v39, 7  ;;  %v36_v61 = vadd.s32 16, %v2642_v39  ;;  %v37_v62 = vadd.s32 24, %v2642_v39 }
  0x15   :  { %2119 = vmatpush3.msra.mxu1 %v170_v6  ;;  %1810 = vmatpush3.msra.mxu0 %v137_v7  ;;  %v149_v18 = vld [vmem:[%s3588_s1 + $0xc8] sm:$0xff]  ;;  %v148_v21 = vld [vmem:[%s3588_s1 + $0xc0] sm:$0xff]  ;;  %v147_v24 = vld [vmem:[%s3588_s1 + $0xb8] sm:$0xff]  ;;  %v49_v59 = vand.u32 15, %v35_v47  ;;  %vm2703_vm2 = vcmp.ne.s32.totalorder %v42_v50, 0  ;;  %s1715_s19 = sld [smem:[#allocation2 + $0x4]] }
  0x16   :  { %2120 = vmatprep.subr.mxu1 %v169_v8  ;;  %1811 = vmatprep.subr.mxu0 %v152_v9  ;;  %v133_v19 = vld [vmem:[%s3588_s1 + $0x48] sm:$0xff]  ;;  %v132_v22 = vld [vmem:[%s3588_s1 + $0x40] sm:$0xff]  ;;  %v131_v25 = vld [vmem:[%s3588_s1 + $0x38] sm:$0xff]  ;;  %s1733_s26 = sld [smem:[#allocation2 + $0x5]] }
  0x17   :  { %2121 = vmatpush3.msra.mxu1 %v169_v8  ;;  %1812 = vmatpush3.msra.mxu0 %v136_v10  ;;  %v165_v20 = vld [vmem:[%s3588_s1 + $0x148] sm:$0xff]  ;;  %v164_v23 = vld [vmem:[%s3588_s1 + $0x140] sm:$0xff]  ;;  %v163_v26 = vld [vmem:[%s3588_s1 + $0x138] sm:$0xff]  ;;  %vm2723_vm3 = vcmp.ne.s32.totalorder %v49_v59, 15  ;;  %v63_v8 = vand.u32 15, %v37_v62  ;;  %s1787_s21 = sld [smem:[#allocation2 + $0x8]] }
  0x18   :  { %2122 = vmatprep.subr.mxu1 %v168_v11  ;;  %1813 = vmatprep.subr.mxu0 %v151_v12  ;;  %v146_v27 = vld [vmem:[%s3588_s1 + $0xb0] sm:$0xff]  ;;  %v145_v30 = vld [vmem:[%s3588_s1 + $0xa8] sm:$0xff]  ;;  %v144_v34 = vld [vmem:[%s3588_s1 + $0xa0] sm:$0xff] }
  0x19   :  { %2123 = vmatpush3.msra.mxu1 %v168_v11  ;;  %1814 = vmatpush3.msra.mxu0 %v135_v13  ;;  %v130_v28 = vld [vmem:[%s3588_s1 + $0x30] sm:$0xff]  ;;  %v129_v32 = vld [vmem:[%s3588_s1 + $0x28] sm:$0xff]  ;;  %v128_v35 = vld [vmem:[%s3588_s1 + $0x20] sm:$0xff]  ;;  %v56_v11 = vand.u32 15, %v36_v61  ;;  %vm2746_vm4 = vcmp.ne.s32.totalorder %v63_v8, 15 }
  0x1a   :  { %2124 = vmatprep.subr.mxu1 %v167_v14  ;;  %1815 = vmatprep.subr.mxu0 %v150_v15  ;;  %v162_v29 = vld [vmem:[%s3588_s1 + $0x130] sm:$0xff]  ;;  %v161_v33 = vld [vmem:[%s3588_s1 + $0x128] sm:$0xff]  ;;  %v160_v36 = vld [vmem:[%s3588_s1 + $0x120] sm:$0xff] }
  0x1b   :  { %2125 = vmatpush3.msra.mxu1 %v167_v14  ;;  %1816 = vmatpush3.msra.mxu0 %v134_v16  ;;  %v143_v37 = vld [vmem:[%s3588_s1 + $0x98] sm:$0xff]  ;;  %v2650_v41 = vld [vmem:[%s3587_s0] sm:$0xff]  ;;  %v142_v43 = vld [vmem:[%s3588_s1 + $0x90] sm:$0xff]  ;;  %vm2756_vm5 = vcmp.ne.s32.totalorder %v56_v11, 0 }
  0x1c   :  { %2126 = vmatprep.subr.mxu1 %v166_v17  ;;  %1817 = vmatprep.subr.mxu0 %v149_v18  ;;  %v127_v38 = vld [vmem:[%s3588_s1 + $0x18] sm:$0xff]  ;;  %v126_v44 = vld [vmem:[%s3588_s1 + $0x10] sm:$0xff]  ;;  %v2669_v46 = vld [vmem:[%s3587_s0 + $0x8] sm:$0xff]  ;;  %v98_v49 = vrot.slane %v2650_v41, 7  ;;  %v111_v55 = vrot.slane %v2650_v41, 1 }
  0x1d   :  { %2127 = vmatpush3.msra.mxu1 %v166_v17  ;;  %1818 = vmatpush3.msra.mxu0 %v133_v19  ;;  %v159_v40 = vld [vmem:[%s3588_s1 + $0x118] sm:$0xff]  ;;  %v158_v45 = vld [vmem:[%s3588_s1 + $0x110] sm:$0xff]  ;;  %v141_v48 = vld [vmem:[%s3588_s1 + $0x88] sm:$0xff]  ;;  %v112_v57 = vrot.slane %v2669_v46, 1  ;;  %v99_v2 = vrot.slane %v2669_v46, 7 }
  0x1e   :  { %2128 = vmatprep.subr.mxu1 %v165_v20  ;;  %1819 = vmatprep.subr.mxu0 %v148_v21  ;;  %v2655_v42 = vld [vmem:[%s3587_s0 + $0x18] sm:$0xff]  ;;  %v2681_v52 = vld [vmem:[%s3587_s0 + $0x10] sm:$0xff]  ;;  %v125_v53 = vld [vmem:[%s3588_s1 + $0x8] sm:$0xff] }
  0x1f   :  { %2129 = vmatpush3.msra.mxu1 %v165_v20  ;;  %1820 = vmatpush3.msra.mxu0 %v132_v22  ;;  %v101_v51 = vrot.slane %v2655_v42, 7  ;;  %v140_v54 = vld [vmem:[%s3588_s1 + $0x80] sm:$0xff]  ;;  %v157_v56 = vld [vmem:[%s3588_s1 + $0x108] sm:$0xff]  ;;  %v113_v60 = vrot.slane %v2681_v52, 1  ;;  %v114_v3 = vrot.slane %v2655_v42, 1  ;;  %v118_v4 = vsel %vm115_vm1, %v111_v55, %v112_v57  ;;  %v1635_v5 = vld [vmem:[%s3588_s1 + $0x2f8] sm:$0xff] }
  0x20   :  { %2130 = vmatprep.subr.mxu1 %v164_v23  ;;  %1821 = vmatprep.subr.mxu0 %v147_v24  ;;  %v124_v58 = vld [vmem:[%s3588_s1] sm:$0xff]  ;;  %v1619_v9 = vld [vmem:[%s3588_s1 + $0x278] sm:$0xff]  ;;  %v105_v10 = vsel %vm102_vm0, %v98_v49, %v99_v2  ;;  %v100_v12 = vrot.slane %v2681_v52, 7  ;;  %v1634_v14 = vld [vmem:[%s3588_s1 + $0x2f0] sm:$0xff] }
  0x21   :  { %2131 = vmatpush3.msra.mxu1 %v164_v23  ;;  %1822 = vmatpush3.msra.mxu0 %v131_v25  ;;  %v106_v0 = vsel %vm102_vm0, %v101_v51, %v98_v49  ;;  %v156_v1 = vld [vmem:[%s3588_s1 + $0x100] sm:$0xff]  ;;  %v117_v7 = vsel %vm115_vm1, %v112_v57, %v113_v60  ;;  %v116_v13 = vsel %vm115_vm1, %v113_v60, %v114_v3  ;;  %v1603_v15 = vld [vmem:[%s3588_s1 + $0x1f8] sm:$0xff]  ;;  %v1618_v18 = vld [vmem:[%s3588_s1 + $0x270] sm:$0xff] }
  0x22   :  { %2132 = vmatprep.subr.mxu1 %v163_v26  ;;  %1823 = vmatprep.subr.mxu0 %v146_v27  ;;  %v119_v17 = vsel %vm115_vm1, %v114_v3, %v111_v55  ;;  %v104_v20 = vsel %vm102_vm0, %v99_v2, %v100_v12  ;;  %v1633_v21 = vld [vmem:[%s3588_s1 + $0x2e8] sm:$0xff]  ;;  %v1602_v22 = vld [vmem:[%s3588_s1 + $0x1f0] sm:$0xff]  ;;  %v1632_v23 = vld [vmem:[%s3588_s1 + $0x2e0] sm:$0xff]  ;;  %v103_v25 = vsel %vm102_vm0, %v100_v12, %v101_v51 }
  0x23   :  { %2133 = vmatpush3.msra.mxu1 %v163_v26  ;;  %1824 = vmatpush3.msra.mxu0 %v130_v28  ;;  %v1617_v24 = vld [vmem:[%s3588_s1 + $0x268] sm:$0xff]  ;;  %v1631_v26 = vld [vmem:[%s3588_s1 + $0x2d8] sm:$0xff]  ;;  %v1616_v28 = vld [vmem:[%s3588_s1 + $0x260] sm:$0xff] }
  0x24   :  { %2134 = vmatprep.subr.mxu1 %v162_v29  ;;  %1825 = vmatprep.subr.mxu0 %v145_v30  ;;  %v1601_v27 = vld [vmem:[%s3588_s1 + $0x1e8] sm:$0xff]  ;;  %v1600_v30 = vld [vmem:[%s3588_s1 + $0x1e0] sm:$0xff]  ;;  %v1615_v31 = vld [vmem:[%s3588_s1 + $0x258] sm:$0xff] }
  0x25   :  { %2135 = vmatpush3.msra.mxu1 %v162_v29  ;;  %1826 = vmatpush3.msra.mxu0 %v129_v32  ;;  %v1630_v29 = vld [vmem:[%s3588_s1 + $0x2d0] sm:$0xff]  ;;  %v1629_v32 = vld [vmem:[%s3588_s1 + $0x2c8] sm:$0xff]  ;;  %v1623_v51 = vld [vmem:[%s3588_s1 + $0x298] sm:$0xff] }
  0x26   :  { %2136 = vmatprep.subr.mxu1 %v161_v33  ;;  %1827 = vmatprep.subr.mxu0 %v144_v34  ;;  %v1614_v34 = vld [vmem:[%s3588_s1 + $0x250] sm:$0xff]  ;;  %v1609_v50 = vld [vmem:[%s3588_s1 + $0x228] sm:$0xff]  ;;  %v1592_v55 = vld [vmem:[%s3588_s1 + $0x1a0] sm:$0xff] }
  0x27   :  { %2137 = vmatpush3.msra.mxu1 %v161_v33  ;;  %1828 = vmatpush3.msra.mxu0 %v128_v35  ;;  %v1599_v33 = vld [vmem:[%s3588_s1 + $0x1d8] sm:$0xff]  ;;  %v1628_v35 = vld [vmem:[%s3588_s1 + $0x2c0] sm:$0xff]  ;;  %v1610_v47 = vld [vmem:[%s3588_s1 + $0x230] sm:$0xff] }
  0x28   :  { %2138 = vmatprep.subr.mxu1 %v160_v36  ;;  %1829 = vmatprep.subr.mxu0 %v143_v37  ;;  %v1613_v37 = vld [vmem:[%s3588_s1 + $0x248] sm:$0xff]  ;;  %v1594_v49 = vld [vmem:[%s3588_s1 + $0x1b0] sm:$0xff]  ;;  %v1620_v60 = vld [vmem:[%s3588_s1 + $0x280] sm:$0xff] }
  0x29   :  { %2139 = vmatpush3.msra.mxu1 %v160_v36  ;;  %1830 = vmatpush3.msra.mxu0 %v127_v38  ;;  %v1598_v36 = vld [vmem:[%s3588_s1 + $0x1d0] sm:$0xff]  ;;  %v1627_v38 = vld [vmem:[%s3588_s1 + $0x2b8] sm:$0xff]  ;;  %v1621_v57 = vld [vmem:[%s3588_s1 + $0x288] sm:$0xff] }
  0x2a   :  { %2140 = vmatprep.subr.mxu1 %v159_v40  ;;  %1831 = vmatprep.subr.mxu0 %v142_v43  ;;  %v1596_v43 = vld [vmem:[%s3588_s1 + $0x1c0] sm:$0xff]  ;;  %v1606_v59 = vld [vmem:[%s3588_s1 + $0x210] sm:$0xff]  ;;  %v1605_v62 = vld [vmem:[%s3588_s1 + $0x208] sm:$0xff] }
  0x2b   :  { %2141 = vmatpush3.msra.mxu1 %v159_v40  ;;  %1832 = vmatpush3.msra.mxu0 %v126_v44  ;;  %v1597_v40 = vld [vmem:[%s3588_s1 + $0x1c8] sm:$0xff]  ;;  %v1611_v44 = vld [vmem:[%s3588_s1 + $0x238] sm:$0xff]  ;;  %v1590_v61 = vld [vmem:[%s3588_s1 + $0x190] sm:$0xff] }
  0x2c   :  { %2142 = vmatprep.subr.mxu1 %v158_v45  ;;  %1833 = vmatprep.subr.mxu0 %v141_v48  ;;  %v1624_v48 = vld [vmem:[%s3588_s1 + $0x2a0] sm:$0xff]  ;;  %v1689_v3 = vld [vmem:[%s3588_s1 + $0x478] sm:$0xff]  ;;  %v913_v19 = vld [vmem:[%s3589_s2 + $0x70] sm:$0xff] }
  0x2d   :  { %241 = vmatprep.mubr.f32.mxu0 %v2650_v41  ;;  %1834 = vmatpush3.msra.mxu0 %v125_v53  ;;  %v1612_v41 = vld [vmem:[%s3588_s1 + $0x240] sm:$0xff]  ;;  %v914_v16 = vld [vmem:[%s3589_s2 + $0x78] sm:$0xff]  ;;  %v912_v39 = vld [vmem:[%s3589_s2 + $0x68] sm:$0xff] }
  0x2e   :  { %2143 = vmatpush3.msra.mxu1 %v158_v45  ;;  %1835 = vmatprep.subr.mxu0 %v140_v54  ;;  %v1625_v45 = vld [vmem:[%s3588_s1 + $0x2a8] sm:$0xff]  ;;  %v1608_v53 = vld [vmem:[%s3588_s1 + $0x220] sm:$0xff]  ;;  %v1622_v54 = vld [vmem:[%s3588_s1 + $0x290] sm:$0xff] }
  0x2f   :  { %2144 = vmatprep.subr.mxu1 %v157_v56  ;;  %1836 = vmatpush3.msra.mxu0 %v124_v58  ;;  %v1591_v58 = vld [vmem:[%s3588_s1 + $0x198] sm:$0xff]  ;;  %v1588_v2 = vld [vmem:[%s3588_s1 + $0x180] sm:$0xff] }
  0x30   :  { %2145 = vmatpush3.msra.mxu1 %v157_v56  ;;  %1584 = vmatmul.mubr.msk.f32.vlgmr.msra.gmra.mxu0 %vm2703_vm2, %v106_v0  ;;  %v1607_v56 = vld [vmem:[%s3588_s1 + $0x218] sm:$0xff]  ;;  %v1589_v0 = vld [vmem:[%s3588_s1 + $0x188] sm:$0xff]  ;;  %v1583_v8 = vld [vmem:[%s3590_s3] ss:$0 sm:$0xff] }
  0x31   :  { %2146 = vmatprep.subr.mxu1 %v156_v1  ;;  %246 = vmatprep.mubr.f32.mxu0 %v2669_v46  ;;  %v1595_v46 = vld [vmem:[%s3588_s1 + $0x1b8] sm:$0xff] }
  0x32   :  { %2147 = vmatpush3.msra.mxu1 %v156_v1  ;;  %2148 = vmatprep.mubr.f32.mxu1 %v118_v4  ;;  %v1604_v1 = vld [vmem:[%s3588_s1 + $0x200] sm:$0xff]  ;;  %v1673_v4 = vld [vmem:[%s3588_s1 + $0x3f8] sm:$0xff] }
  0x33   :  { %2154 = vmatprep.subr.mxu1 %v1635_v5  ;;  %2149 = vmatmul.mubr.msk.f32.vlgmr.msra.gmra.mxu1 %vm2723_vm3, %v117_v7 }
  0x34   :  { %1869 = vmatprep.subr.mxu0 %v1619_v9  ;;  %247 = vmatmul.mubr.f32.gmra.mxu0 %v105_v10 }
  0x35   :  { %2151 = vmatprep.mubr.f32.mxu1 %v116_v13  ;;  %251 = vmatprep.mubr.f32.mxu0 %v2681_v52  ;;  %v1593_v52 = vld [vmem:[%s3588_s1 + $0x1a8] sm:$0xff] }
  0x36   :  { %2155 = vmatpush3.msra.mxu1 %v1635_v5  ;;  %1870 = vmatpush3.msra.mxu0 %v1603_v15  ;;  %v352_v15 = vstv %s347_s15 }
  0x37   :  { %2156 = vmatprep.subr.mxu1 %v1634_v14  ;;  %2152 = vmatmul.mubr.msk.f32.gmra.mxu1 %vm2746_vm4, %v119_v17 }
  0x38   :  { %1871 = vmatprep.subr.mxu0 %v1618_v18  ;;  %1585 = vmatmul.mubr.msk.f32.gmra.mxu0 %vm2756_vm5, %v104_v20 }
  0x39   :  { %2157 = vmatpush3.msra.mxu1 %v1634_v14  ;;  %256 = vmatprep.mubr.f32.mxu0 %v2655_v42  ;;  %v1626_v42 = vld [vmem:[%s3588_s1 + $0x2b0] sm:$0xff] }
  0x3a   :  { %2158 = vmatprep.subr.mxu1 %v1633_v21  ;;  %1872 = vmatpush3.msra.mxu0 %v1602_v22 }
  0x3b   :  { %2159 = vmatpush3.msra.mxu1 %v1633_v21  ;;  %1873 = vmatprep.subr.mxu0 %v1617_v24 }
  0x3c   :  { %2160 = vmatprep.subr.mxu1 %v1632_v23  ;;  %257 = vmatmul.mubr.f32.gmra.mxu0 %v103_v25 }
  0x3d   :  { %2161 = vmatpush3.msra.mxu1 %v1632_v23  ;;  %1874 = vmatpush3.msra.mxu0 %v1601_v27 }
  0x3e   :  { %2162 = vmatprep.subr.mxu1 %v1631_v26  ;;  %1875 = vmatprep.subr.mxu0 %v1616_v28 }
  0x3f   :  { %2163 = vmatpush3.msra.mxu1 %v1631_v26  ;;  %1876 = vmatpush3.msra.mxu0 %v1600_v30 }
  0x40   :  { %2164 = vmatprep.subr.mxu1 %v1630_v29  ;;  %1877 = vmatprep.subr.mxu0 %v1615_v31 }
  0x41   :  { %2165 = vmatpush3.msra.mxu1 %v1630_v29  ;;  %1878 = vmatpush3.msra.mxu0 %v1599_v33 }
  0x42   :  { %2166 = vmatprep.subr.mxu1 %v1629_v32  ;;  %1879 = vmatprep.subr.mxu0 %v1614_v34 }
  0x43   :  { %2167 = vmatpush3.msra.mxu1 %v1629_v32  ;;  %1880 = vmatpush3.msra.mxu0 %v1598_v36 }
  0x44   :  { %2168 = vmatprep.subr.mxu1 %v1628_v35  ;;  %1881 = vmatprep.subr.mxu0 %v1613_v37 }
  0x45   :  { %2169 = vmatpush3.msra.mxu1 %v1628_v35  ;;  %1882 = vmatpush3.msra.mxu0 %v1597_v40 }
  0x46   :  { %2170 = vmatprep.subr.mxu1 %v1627_v38  ;;  %1883 = vmatprep.subr.mxu0 %v1612_v41 }
  0x47   :  { %2171 = vmatpush3.msra.mxu1 %v1627_v38  ;;  %1884 = vmatpush3.msra.mxu0 %v1596_v43 }
  0x48   :  { %2172 = vmatprep.subr.mxu1 %v1626_v42  ;;  %1885 = vmatprep.subr.mxu0 %v1611_v44 }
  0x49   :  { %2173 = vmatpush3.msra.mxu1 %v1626_v42  ;;  %1886 = vmatpush3.msra.mxu0 %v1595_v46 }
  0x4a   :  { %2174 = vmatprep.subr.mxu1 %v1625_v45  ;;  %1887 = vmatprep.subr.mxu0 %v1610_v47  ;;  %v1688_v47 = vld [vmem:[%s3588_s1 + $0x470] sm:$0xff] }
  0x4b   :  { %2175 = vmatpush3.msra.mxu1 %v1625_v45  ;;  %1888 = vmatpush3.msra.mxu0 %v1594_v49 }
  0x4c   :  { %2176 = vmatprep.subr.mxu1 %v1624_v48  ;;  %1889 = vmatprep.subr.mxu0 %v1609_v50 }
  0x4d   :  { %2177 = vmatpush3.msra.mxu1 %v1624_v48  ;;  %1890 = vmatpush3.msra.mxu0 %v1593_v52 }
  0x4e   :  { %2178 = vmatprep.subr.mxu1 %v1623_v51  ;;  %1891 = vmatprep.subr.mxu0 %v1608_v53 }
  0x4f   :  { %2179 = vmatpush3.msra.mxu1 %v1623_v51  ;;  %1892 = vmatpush3.msra.mxu0 %v1592_v55 }
  0x50   :  { %2180 = vmatprep.subr.mxu1 %v1622_v54  ;;  %1893 = vmatprep.subr.mxu0 %v1607_v56  ;;  %v1687_v56 = vld [vmem:[%s3588_s1 + $0x468] sm:$0xff] }
  0x51   :  { %2181 = vmatpush3.msra.mxu1 %v1622_v54  ;;  %1894 = vmatpush3.msra.mxu0 %v1591_v58 }
  0x52   :  { %2182 = vmatprep.subr.mxu1 %v1621_v57  ;;  %1895 = vmatprep.subr.mxu0 %v1606_v59 }
  0x53   :  { %2183 = vmatpush3.msra.mxu1 %v1621_v57  ;;  %1896 = vmatpush3.msra.mxu0 %v1590_v61  ;;  %v1657_v61 = vld [vmem:[%s3588_s1 + $0x378] sm:$0xff] }
  0x54   :  { %2184 = vmatprep.subr.mxu1 %v1620_v60  ;;  %1897 = vmatprep.subr.mxu0 %v1605_v62  ;;  %v1672_v62 = vld [vmem:[%s3588_s1 + $0x3f0] sm:$0xff] }
  0x55   :  { %2185 = vmatpush3.msra.mxu1 %v1620_v60  ;;  %1898 = vmatpush3.msra.mxu0 %v1589_v0  ;;  %v1686_v0 = vld [vmem:[%s3588_s1 + $0x460] sm:$0xff] }
  0x56   :  { %1899 = vmatprep.subr.mxu0 %v1604_v1  ;;  %2192 = vmatprep.subr.mxu1 %v1689_v3  ;;  %v1656_v1 = vld [vmem:[%s3588_s1 + $0x370] sm:$0xff] }
  0x57   :  { %1900 = vmatpush3.msra.mxu0 %v1588_v2  ;;  %v1671_v2 = vld [vmem:[%s3588_s1 + $0x3e8] sm:$0xff] }
  0x58   :  { %1933 = vmatprep.subr.mxu0 %v1673_v4  ;;  %v1655_v4 = vld [vmem:[%s3588_s1 + $0x368] sm:$0xff] }
  0xf0   :  { %v1837_v5 = vpop.f32.mrf.mxu0 }
  0xf2   :  { %v1838_v7 = vpop.f32.mrf.mxu0 }
  0xf3   :  { %v1839_v9 = vadd.f32 %v1838_v7, %v1837_v5  ;;  %v2150_v10 = vpop.f32.mrf.mxu1  ;;  %v1670_v5 = vld [vmem:[%s3588_s1 + $0x3e0] sm:$0xff]  ;;  %v1684_v7 = vld [vmem:[%s3588_s1 + $0x450] sm:$0xff] }
  0xf4   :  { %v1840_v11 = vpop.f32.mrf.mxu0 }
  0xf5   :  { %v244_v12 = vadd.f32 %v1839_v9, %v1583_v8  ;;  %v328_v13 = vpop.f32.mrf.mxu1  ;;  %v1669_v9 = vld [vmem:[%s3588_s1 + $0x3d8] sm:$0xff] }
  0xf6   :  { %v1841_v14 = vpop.f32.mrf.mxu0 }
  0xf7   :  { %v1842_v17 = vadd.f32 %v1841_v14, %v1840_v11  ;;  %v329_v18 = vadd.f32 %v328_v13, %v244_v12  ;;  %v2153_v21 = vpop.f32.mrf.mxu1  ;;  %v1653_v11 = vld [vmem:[%s3588_s1 + $0x358] sm:$0xff]  ;;  %v1668_v12 = vld [vmem:[%s3588_s1 + $0x3d0] sm:$0xff]  ;;  %v1682_v13 = vld [vmem:[%s3588_s1 + $0x440] sm:$0xff] }
  0xf8   :  { %v1843_v20 = vpop.f32.mrf.mxu0  ;;  %v1652_v14 = vld [vmem:[%s3588_s1 + $0x350] sm:$0xff] }
  0xf9   :  { %v249_v22 = vadd.f32 %v1842_v17, %v1583_v8  ;;  %v353_v23 = vmul.f32 %v352_v15, %v329_v18  ;;  %vm348_vm6 = vcmp.gt.f32.partialorder %v329_v18, 0.0  ;;  %v338_v29 = vpop.f32.mrf.mxu1  ;;  %v1681_v17 = vld [vmem:[%s3588_s1 + $0x438] sm:$0xff] }
  0xfa   :  { %v1844_v24 = vpop.f32.mrf.mxu0 }
  0xfb   :  { %v334_v25 = vadd.f32 %v2150_v10, %v249_v22  ;;  %v1845_v26 = vadd.f32 %v1844_v24, %v1843_v20  ;;  %v357_v27 = vsel %vm348_vm6, %v329_v18, %v353_v23  ;;  %v1683_v10 = vld [vmem:[%s3588_s1 + $0x448] sm:$0xff]  ;;  %v1666_v20 = vld [vmem:[%s3588_s1 + $0x3c0] sm:$0xff]  ;;  %v1665_v23 = vld [vmem:[%s3588_s1 + $0x3b8] sm:$0xff] }
  0xfc   :  { %v1846_v28 = vpop.f32.mrf.mxu0  ;;  %503 = vmatprep.mubr.f32.mxu0 %v357_v27  ;;  %v373_v36 = vrot.slane %v357_v27, 1  ;;  %v361_v49 = vrot.slane %v357_v27, 7  ;;  %v1651_v18 = vld [vmem:[%s3588_s1 + $0x348] sm:$0xff]  ;;  %v1650_v22 = vld [vmem:[%s3588_s1 + $0x340] sm:$0xff] }
  0xfd   :  { %vm349_vm7 = vcmp.gt.f32.partialorder %v334_v25, 0.0  ;;  %v354_v30 = vmul.f32 %v352_v15, %v334_v25  ;;  %v254_v31 = vadd.f32 %v1845_v26, %v1583_v8  ;;  %v1679_v24 = vld [vmem:[%s3588_s1 + $0x428] sm:$0xff]  ;;  %v1664_v26 = vld [vmem:[%s3588_s1 + $0x3b0] sm:$0xff]  ;;  %v1678_v27 = vld [vmem:[%s3588_s1 + $0x420] sm:$0xff] }
  0xfe   :  { %v1847_v32 = vpop.f32.mrf.mxu0 }
  0xff   :  { %v1848_v33 = vadd.f32 %v1847_v32, %v1846_v28  ;;  %v339_v34 = vadd.f32 %v338_v29, %v254_v31  ;;  %v358_v35 = vsel %vm349_vm7, %v334_v25, %v354_v30  ;;  %v1649_v25 = vld [vmem:[%s3588_s1 + $0x338] sm:$0xff]  ;;  %v1648_v28 = vld [vmem:[%s3588_s1 + $0x330] sm:$0xff]  ;;  %v1663_v29 = vld [vmem:[%s3588_s1 + $0x3a8] sm:$0xff] }
 0x100   :  { %v374_v37 = vrot.slane %v358_v35, 1  ;;  %v362_v55 = vrot.slane %v358_v35, 7  ;;  %v1677_v30 = vld [vmem:[%s3588_s1 + $0x418] sm:$0xff]  ;;  %v1647_v31 = vld [vmem:[%s3588_s1 + $0x328] sm:$0xff]  ;;  %v1662_v32 = vld [vmem:[%s3588_s1 + $0x3a0] sm:$0xff] }
 0x101   :  { %v259_v38 = vadd.f32 %v1848_v33, %v1583_v8  ;;  %vm350_vm8 = vcmp.gt.f32.partialorder %v339_v34, 0.0  ;;  %v355_v40 = vmul.f32 %v352_v15, %v339_v34  ;;  %v1654_v8 = vld [vmem:[%s3588_s1 + $0x360] sm:$0xff]  ;;  %v1676_v33 = vld [vmem:[%s3588_s1 + $0x410] sm:$0xff] }
 0x102   :  { %v379_v41 = vsel %vm115_vm1, %v373_v36, %v374_v37  ;;  %v367_v58 = vsel %vm102_vm0, %v361_v49, %v362_v55 }
 0x103   :  { %v344_v42 = vadd.f32 %v2153_v21, %v259_v38  ;;  %v359_v43 = vsel %vm350_vm8, %v339_v34, %v355_v40  ;;  %2186 = vmatprep.mubr.f32.mxu1 %v379_v41  ;;  %v1680_v21 = vld [vmem:[%s3588_s1 + $0x430] sm:$0xff]  ;;  %v1646_v34 = vld [vmem:[%s3588_s1 + $0x320] sm:$0xff] }
 0x104   :  { %v375_v44 = vrot.slane %v359_v43, 1  ;;  %v363_v57 = vrot.slane %v359_v43, 7  ;;  %v1660_v38 = vld [vmem:[%s3588_s1 + $0x390] sm:$0xff]  ;;  %v1674_v40 = vld [vmem:[%s3588_s1 + $0x400] sm:$0xff] }
 0x105   :  { %vm351_vm9 = vcmp.gt.f32.partialorder %v344_v42, 0.0  ;;  %v356_v45 = vmul.f32 %v352_v15, %v344_v42  ;;  %v1667_v15 = vld [vmem:[%s3588_s1 + $0x3c8] sm:$0xff]  ;;  %v1644_v41 = vld [vmem:[%s3588_s1 + $0x310] sm:$0xff] }
 0x106   :  { %v378_v46 = vsel %vm115_vm1, %v374_v37, %v375_v44  ;;  %v366_v59 = vsel %vm102_vm0, %v362_v55, %v363_v57  ;;  %v1645_v37 = vld [vmem:[%s3588_s1 + $0x318] sm:$0xff]  ;;  %v614_v55 = vstv %s1641_s27 }
 0x107   :  { %v360_v48 = vsel %vm351_vm9, %v344_v42, %v356_v45  ;;  %2187 = vmatmul.mubr.msk.f32.vlgmr.msra.gmra.mxu1 %vm2723_vm3, %v378_v46  ;;  %v1659_v42 = vld [vmem:[%s3588_s1 + $0x388] sm:$0xff]  ;;  %v1642_v45 = vld [vmem:[%s3588_s1 + $0x300] sm:$0xff] }
 0x108   :  { %v364_v50 = vrot.slane %v360_v48, 7  ;;  %v376_v51 = vrot.slane %v360_v48, 1  ;;  %2193 = vmatpush3.msra.mxu1 %v1689_v3  ;;  %v1685_v3 = vld [vmem:[%s3588_s1 + $0x458] sm:$0xff] }
 0x109   :  { %2194 = vmatprep.subr.mxu1 %v1688_v47 }
 0x10a   :  { %v368_v52 = vsel %vm102_vm0, %v364_v50, %v361_v49  ;;  %v377_v53 = vsel %vm115_vm1, %v375_v44, %v376_v51  ;;  %v380_v54 = vsel %vm115_vm1, %v376_v51, %v373_v36  ;;  %2195 = vmatpush3.msra.mxu1 %v1688_v47  ;;  %v365_v60 = vsel %vm102_vm0, %v363_v57, %v364_v50  ;;  %v1675_v36 = vld [vmem:[%s3588_s1 + $0x408] sm:$0xff]  ;;  %v1658_v44 = vld [vmem:[%s3588_s1 + $0x380] sm:$0xff] }
 0x10b   :  { %1637 = vmatmul.mubr.msk.f32.vlgmr.msra.gmra.mxu0 %vm2703_vm2, %v368_v52  ;;  %2189 = vmatprep.mubr.f32.mxu1 %v377_v53 }
 0x10c   :  { %508 = vmatprep.mubr.f32.mxu0 %v358_v35  ;;  %2190 = vmatmul.mubr.msk.f32.gmra.mxu1 %vm2746_vm4, %v380_v54  ;;  %v1661_v35 = vld [vmem:[%s3588_s1 + $0x398] sm:$0xff] }
 0x10d   :  { %2196 = vmatprep.subr.mxu1 %v1687_v56  ;;  %1934 = vmatpush3.msra.mxu0 %v1657_v61 }
 0x10e   :  { %2197 = vmatpush3.msra.mxu1 %v1687_v56  ;;  %1935 = vmatprep.subr.mxu0 %v1672_v62 }
 0x10f   :  { %509 = vmatmul.mubr.f32.gmra.mxu0 %v367_v58  ;;  %2198 = vmatprep.subr.mxu1 %v1686_v0 }
 0x110   :  { %513 = vmatprep.mubr.f32.mxu0 %v359_v43  ;;  %1936 = vmatpush3.msra.mxu0 %v1656_v1  ;;  %v1643_v43 = vld [vmem:[%s3588_s1 + $0x308] sm:$0xff] }
 0x111   :  { %2199 = vmatpush3.msra.mxu1 %v1686_v0  ;;  %1937 = vmatprep.subr.mxu0 %v1671_v2 }
 0x112   :  { %2200 = vmatprep.subr.mxu1 %v1685_v3  ;;  %1938 = vmatpush3.msra.mxu0 %v1655_v4 }
 0x113   :  { %1638 = vmatmul.mubr.msk.f32.gmra.mxu0 %vm2756_vm5, %v366_v59  ;;  %2201 = vmatpush3.msra.mxu1 %v1685_v3 }
 0x114   :  { %518 = vmatprep.mubr.f32.mxu0 %v360_v48  ;;  %1939 = vmatprep.subr.mxu0 %v1670_v5  ;;  %v1636_v48 = vld [vmem:[%s3590_s3 + $0x1] ss:$0 sm:$0xff] }
 0x115   :  { %2202 = vmatprep.subr.mxu1 %v1684_v7  ;;  %1940 = vmatpush3.msra.mxu0 %v1654_v8 }
 0x116   :  { %2203 = vmatpush3.msra.mxu1 %v1684_v7  ;;  %1941 = vmatprep.subr.mxu0 %v1669_v9 }
 0x117   :  { %519 = vmatmul.mubr.f32.gmra.mxu0 %v365_v60  ;;  %2204 = vmatprep.subr.mxu1 %v1683_v10 }
 0x118   :  { %1942 = vmatpush3.msra.mxu0 %v1653_v11  ;;  %2205 = vmatpush3.msra.mxu1 %v1683_v10 }
 0x119   :  { %1943 = vmatprep.subr.mxu0 %v1668_v12  ;;  %2206 = vmatprep.subr.mxu1 %v1682_v13 }
 0x11a   :  { %1944 = vmatpush3.msra.mxu0 %v1652_v14  ;;  %2207 = vmatpush3.msra.mxu1 %v1682_v13 }
 0x11b   :  { %1945 = vmatprep.subr.mxu0 %v1667_v15  ;;  %2208 = vmatprep.subr.mxu1 %v1681_v17 }
 0x11c   :  { %1946 = vmatpush3.msra.mxu0 %v1651_v18  ;;  %2209 = vmatpush3.msra.mxu1 %v1681_v17 }
 0x11d   :  { %1947 = vmatprep.subr.mxu0 %v1666_v20  ;;  %2210 = vmatprep.subr.mxu1 %v1680_v21 }
 0x11e   :  { %1948 = vmatpush3.msra.mxu0 %v1650_v22  ;;  %2211 = vmatpush3.msra.mxu1 %v1680_v21 }
 0x11f   :  { %1949 = vmatprep.subr.mxu0 %v1665_v23  ;;  %2212 = vmatprep.subr.mxu1 %v1679_v24 }
 0x120   :  { %1950 = vmatpush3.msra.mxu0 %v1649_v25  ;;  %2213 = vmatpush3.msra.mxu1 %v1679_v24 }
 0x121   :  { %1951 = vmatprep.subr.mxu0 %v1664_v26  ;;  %2214 = vmatprep.subr.mxu1 %v1678_v27 }
 0x122   :  { %1952 = vmatpush3.msra.mxu0 %v1648_v28  ;;  %2215 = vmatpush3.msra.mxu1 %v1678_v27 }
 0x123   :  { %1953 = vmatprep.subr.mxu0 %v1663_v29  ;;  %2216 = vmatprep.subr.mxu1 %v1677_v30 }
 0x124   :  { %1954 = vmatpush3.msra.mxu0 %v1647_v31  ;;  %2217 = vmatpush3.msra.mxu1 %v1677_v30 }
 0x125   :  { %1955 = vmatprep.subr.mxu0 %v1662_v32  ;;  %2218 = vmatprep.subr.mxu1 %v1676_v33 }
 0x126   :  { %1956 = vmatpush3.msra.mxu0 %v1646_v34  ;;  %2219 = vmatpush3.msra.mxu1 %v1676_v33  ;;  %v2493_v34 = vmov 0.0  }
 0x127   :  { %1957 = vmatprep.subr.mxu0 %v1661_v35  ;;  %2220 = vmatprep.subr.mxu1 %v1675_v36  ;;  %v911_v35 = vld [vmem:[%s3589_s2 + $0x60] sm:$0xff] }
 0x128   :  { %1958 = vmatpush3.msra.mxu0 %v1645_v37  ;;  %2221 = vmatpush3.msra.mxu1 %v1675_v36  ;;  %v910_v36 = vld [vmem:[%s3589_s2 + $0x58] sm:$0xff]  ;;  %v909_v37 = vld [vmem:[%s3589_s2 + $0x50] sm:$0xff] }
 0x129   :  { %1959 = vmatprep.subr.mxu0 %v1660_v38  ;;  %2222 = vmatprep.subr.mxu1 %v1674_v40  ;;  %v908_v38 = vld [vmem:[%s3589_s2 + $0x48] sm:$0xff] }
 0x12a   :  { %1960 = vmatpush3.msra.mxu0 %v1644_v41  ;;  %2223 = vmatpush3.msra.mxu1 %v1674_v40  ;;  %v907_v40 = vld [vmem:[%s3589_s2 + $0x40] sm:$0xff]  ;;  %v906_v41 = vld [vmem:[%s3589_s2 + $0x38] sm:$0xff] }
 0x12b   :  { %1961 = vmatprep.subr.mxu0 %v1659_v42  ;;  %2265 = vmatprep.subr.mxu1 %v2493_v34  ;;  %v905_v42 = vld [vmem:[%s3589_s2 + $0x30] sm:$0xff] }
 0x12c   :  { %1962 = vmatpush3.msra.mxu0 %v1643_v43  ;;  %v904_v43 = vld [vmem:[%s3589_s2 + $0x28] sm:$0xff] }
 0x12d   :  { %1963 = vmatprep.subr.mxu0 %v1658_v44  ;;  %v903_v44 = vld [vmem:[%s3589_s2 + $0x20] sm:$0xff] }
 0x12e   :  { %1964 = vmatpush3.msra.mxu0 %v1642_v45  ;;  %v902_v45 = vld [vmem:[%s3589_s2 + $0x18] sm:$0xff] }
 0x12f   :  { %2230 = vmatprep.subr.mxu0 %v2493_v34 }
 0x1c7   :  { %v2188_v47 = vpop.f32.mrf.mxu1 }
 0x1c9   :  { %v590_v53 = vpop.f32.mrf.mxu1 }
 0x1cb   :  { %v1901_v46 = vpop.f32.mrf.mxu0 }
 0x1cc   :  { %v2191_v61 = vpop.f32.mrf.mxu1 }
 0x1cd   :  { %v1902_v49 = vpop.f32.mrf.mxu0 }
 0x1ce   :  { %v1903_v50 = vadd.f32 %v1902_v49, %v1901_v46  ;;  %v600_v7 = vpop.f32.mrf.mxu1  ;;  %v901_v46 = vld [vmem:[%s3589_s2 + $0x10] sm:$0xff]  ;;  %v1713_v49 = vld [vmem:[%s3589_s2 + $0xf8] sm:$0xff] }
 0x1cf   :  { %v1904_v51 = vpop.f32.mrf.mxu0 }
 0x1d0   :  { %v506_v52 = vadd.f32 %v1903_v50, %v1636_v48  ;;  %v1712_v50 = vld [vmem:[%s3589_s2 + $0xf0] sm:$0xff] }
 0x1d1   :  { %v1905_v54 = vpop.f32.mrf.mxu0 }
 0x1d2   :  { %v591_v56 = vadd.f32 %v590_v53, %v506_v52  ;;  %v1906_v57 = vadd.f32 %v1905_v54, %v1904_v51  ;;  %v1711_v51 = vld [vmem:[%s3589_s2 + $0xe8] sm:$0xff]  ;;  %v1710_v52 = vld [vmem:[%s3589_s2 + $0xe0] sm:$0xff]  ;;  %v1709_v53 = vld [vmem:[%s3589_s2 + $0xd8] sm:$0xff] }
 0x1d3   :  { %v1907_v58 = vpop.f32.mrf.mxu0  ;;  %v1708_v54 = vld [vmem:[%s3589_s2 + $0xd0] sm:$0xff] }
 0x1d4   :  { %v511_v59 = vadd.f32 %v1906_v57, %v1636_v48  ;;  %vm610_vm10 = vcmp.gt.f32.partialorder %v591_v56, 0.0  ;;  %v615_v60 = vmul.f32 %v614_v55, %v591_v56  ;;  %v1705_v57 = vld [vmem:[%s3589_s2 + $0xb8] sm:$0xff] }
 0x1d5   :  { %v1908_v62 = vpop.f32.mrf.mxu0 }
 0x1d6   :  { %v596_v0 = vadd.f32 %v2188_v47, %v511_v59  ;;  %v1909_v1 = vadd.f32 %v1908_v62, %v1907_v58  ;;  %v619_v2 = vsel %vm610_vm10, %v591_v56, %v615_v60  ;;  %v900_v47 = vld [vmem:[%s3589_s2 + $0x8] sm:$0xff]  ;;  %v1706_v56 = vld [vmem:[%s3589_s2 + $0xc0] sm:$0xff]  ;;  %v1704_v58 = vld [vmem:[%s3589_s2 + $0xb0] sm:$0xff] }
 0x1d7   :  { %v1910_v3 = vpop.f32.mrf.mxu0  ;;  %765 = vmatprep.mubr.f32.mxu0 %v619_v2  ;;  %v635_v12 = vrot.slane %v619_v2, 1  ;;  %v623_v25 = vrot.slane %v619_v2, 7  ;;  %v1703_v59 = vld [vmem:[%s3589_s2 + $0xa8] sm:$0xff]  ;;  %v1702_v60 = vld [vmem:[%s3589_s2 + $0xa0] sm:$0xff] }
 0x1d8   :  { %vm611_vm11 = vcmp.gt.f32.partialorder %v596_v0, 0.0  ;;  %v616_v4 = vmul.f32 %v614_v55, %v596_v0  ;;  %v516_v5 = vadd.f32 %v1909_v1, %v1636_v48  ;;  %v1690_v1 = vld [vmem:[%s3590_s3 + $0x2] ss:$0 sm:$0xff] }
 0x1d9   :  { %v1911_v8 = vpop.f32.mrf.mxu0 }
 0x1da   :  { %v601_v9 = vadd.f32 %v600_v7, %v516_v5  ;;  %v1912_v10 = vadd.f32 %v1911_v8, %v1910_v3  ;;  %v620_v11 = vsel %vm611_vm11, %v596_v0, %v616_v4 }
 0x1db   :  { %v636_v13 = vrot.slane %v620_v11, 1  ;;  %v624_v31 = vrot.slane %v620_v11, 7 }
 0x1dc   :  { %vm612_vm12 = vcmp.gt.f32.partialorder %v601_v9, 0.0  ;;  %v617_v14 = vmul.f32 %v614_v55, %v601_v9  ;;  %v521_v15 = vadd.f32 %v1912_v10, %v1636_v48  ;;  %v899_v48 = vld [vmem:[%s3589_s2] sm:$0xff] }
 0x1dd   :  { %v641_v17 = vsel %vm115_vm1, %v635_v12, %v636_v13  ;;  %v629_v6 = vsel %vm102_vm0, %v623_v25, %v624_v31 }
 0x1de   :  { %v621_v18 = vsel %vm612_vm12, %v601_v9, %v617_v14  ;;  %v606_v20 = vadd.f32 %v2191_v61, %v521_v15  ;;  %2224 = vmatprep.mubr.f32.mxu1 %v641_v17  ;;  %v1701_v61 = vld [vmem:[%s3589_s2 + $0x98] sm:$0xff] }
 0x1df   :  { %v637_v21 = vrot.slane %v621_v18, 1  ;;  %v625_v32 = vrot.slane %v621_v18, 7 }
 0x1e0   :  { %vm613_vm13 = vcmp.gt.f32.partialorder %v606_v20, 0.0  ;;  %v618_v22 = vmul.f32 %v614_v55, %v606_v20  ;;  %v1707_v55 = vld [vmem:[%s3589_s2 + $0xc8] sm:$0xff] }
 0x1e1   :  { %v640_v23 = vsel %vm115_vm1, %v636_v13, %v637_v21  ;;  %v628_v33 = vsel %vm102_vm0, %v624_v31, %v625_v32 }
 0x1e2   :  { %v622_v24 = vsel %vm613_vm13, %v606_v20, %v618_v22  ;;  %2225 = vmatmul.mubr.msk.f32.vlgmr.msra.gmra.mxu1 %vm2723_vm3, %v640_v23  ;;  %vm922_vm3 = vcmask 1041409  }
 0x1e3   :  { %v626_v26 = vrot.slane %v622_v24, 7  ;;  %v638_v27 = vrot.slane %v622_v24, 1  ;;  %2266 = vmatpush3.msra.mxu1 %v1713_v49  ;;  %v1699_v49 = vld [vmem:[%s3589_s2 + $0x88] sm:$0xff] }
 0x1e4   :  { %2267 = vmatprep.subr.mxu1 %v2493_v34 }
 0x1e5   :  { %v630_v28 = vsel %vm102_vm0, %v626_v26, %v623_v25  ;;  %v639_v29 = vsel %vm115_vm1, %v637_v21, %v638_v27  ;;  %v642_v30 = vsel %vm115_vm1, %v638_v27, %v635_v12  ;;  %v627_v63 = vsel %vm102_vm0, %v625_v32, %v626_v26  ;;  %2268 = vmatpush3.msra.mxu1 %v1712_v50  ;;  %v1698_v50 = vld [vmem:[%s3589_s2 + $0x80] sm:$0xff] }
 0x1e6   :  { %1691 = vmatmul.mubr.msk.f32.vlgmr.msra.gmra.mxu0 %vm2703_vm2, %v630_v28  ;;  %2227 = vmatprep.mubr.f32.mxu1 %v639_v29 }
 0x1e7   :  { %770 = vmatprep.mubr.f32.mxu0 %v620_v11  ;;  %2228 = vmatmul.mubr.msk.f32.gmra.mxu1 %vm2746_vm4, %v642_v30  ;;  %v876_v11 = vstv %s1695_s6  ;;  %s1751_s6 = sld [smem:[#allocation2 + $0x6]] }
 0x1e8   :  { %2231 = vmatpush3.msra.mxu0 %v914_v16  ;;  %2297 = vmatprep.mubr.msk.f32.mxu1 %vm2494_vm14, %v2493_v34 }
 0x1e9   :  { %2232 = vmatprep.subr.mxu0 %v2493_v34  ;;  %2269 = vmatprep.subr.mxu1 %v2493_v34 }
 0x1ea   :  { %771 = vmatmul.mubr.f32.gmra.mxu0 %v629_v6  ;;  %2270 = vmatpush3.msra.mxu1 %v1711_v51  ;;  %v1731_v51 = vld [vmem:[%s3589_s2 + $0x178] sm:$0xff] }
 0x1eb   :  { %775 = vmatprep.mubr.f32.mxu0 %v621_v18  ;;  %2233 = vmatpush3.msra.mxu0 %v913_v19 }
 0x1ec   :  { %2234 = vmatprep.subr.mxu0 %v2493_v34  ;;  %2271 = vmatprep.subr.mxu1 %v2493_v34 }
 0x1ed   :  { %2235 = vmatpush3.msra.mxu0 %v912_v39  ;;  %2272 = vmatpush3.msra.mxu1 %v1710_v52  ;;  %v1730_v52 = vld [vmem:[%s3589_s2 + $0x170] sm:$0xff] }
 0x1ee   :  { %1692 = vmatmul.mubr.msk.f32.gmra.mxu0 %vm2756_vm5, %v628_v33  ;;  %2236 = vmatprep.subr.mxu0 %v2493_v34 }
 0x1ef   :  { %780 = vmatprep.mubr.f32.mxu0 %v622_v24  ;;  %2237 = vmatpush3.msra.mxu0 %v911_v35 }
 0x1f0   :  { %2238 = vmatprep.subr.mxu0 %v2493_v34  ;;  %2273 = vmatprep.subr.mxu1 %v2493_v34 }
 0x1f1   :  { %2239 = vmatpush3.msra.mxu0 %v910_v36  ;;  %2274 = vmatpush3.msra.mxu1 %v1709_v53  ;;  %v1729_v53 = vld [vmem:[%s3589_s2 + $0x168] sm:$0xff] }
 0x1f2   :  { %781 = vmatmul.mubr.f32.gmra.mxu0 %v627_v63  ;;  %2240 = vmatprep.subr.mxu0 %v2493_v34 }
 0x1f3   :  { %2241 = vmatpush3.msra.mxu0 %v909_v37  ;;  %2262 = vmatprep.mubr.msk.f32.mxu0 %vm2494_vm14, %v2493_v34 }
 0x1f4   :  { %2242 = vmatprep.subr.mxu0 %v2493_v34  ;;  %2275 = vmatprep.subr.mxu1 %v2493_v34 }
 0x1f5   :  { %2243 = vmatpush3.msra.mxu0 %v908_v38  ;;  %2276 = vmatpush3.msra.mxu1 %v1708_v54  ;;  %v1728_v54 = vld [vmem:[%s3589_s2 + $0x160] sm:$0xff] }
 0x1f6   :  { %2244 = vmatprep.subr.mxu0 %v2493_v34  ;;  %2277 = vmatprep.subr.mxu1 %v2493_v34 }
 0x1f7   :  { %2245 = vmatpush3.msra.mxu0 %v907_v40  ;;  %2278 = vmatpush3.msra.mxu1 %v1707_v55  ;;  %v1727_v55 = vld [vmem:[%s3589_s2 + $0x158] sm:$0xff] }
 0x1f8   :  { %2246 = vmatprep.subr.mxu0 %v2493_v34  ;;  %2279 = vmatprep.subr.mxu1 %v2493_v34 }
 0x1f9   :  { %2247 = vmatpush3.msra.mxu0 %v906_v41  ;;  %2280 = vmatpush3.msra.mxu1 %v1706_v56  ;;  %v1726_v56 = vld [vmem:[%s3589_s2 + $0x150] sm:$0xff] }
 0x1fa   :  { %2248 = vmatprep.subr.mxu0 %v2493_v34  ;;  %2281 = vmatprep.subr.mxu1 %v2493_v34 }
 0x1fb   :  { %2249 = vmatpush3.msra.mxu0 %v905_v42  ;;  %2282 = vmatpush3.msra.mxu1 %v1705_v57  ;;  %v1725_v57 = vld [vmem:[%s3589_s2 + $0x148] sm:$0xff] }
 0x1fc   :  { %2250 = vmatprep.subr.mxu0 %v2493_v34  ;;  %2283 = vmatprep.subr.mxu1 %v2493_v34 }
 0x1fd   :  { %2251 = vmatpush3.msra.mxu0 %v904_v43  ;;  %2284 = vmatpush3.msra.mxu1 %v1704_v58  ;;  %v1724_v58 = vld [vmem:[%s3589_s2 + $0x140] sm:$0xff] }
 0x1fe   :  { %2252 = vmatprep.subr.mxu0 %v2493_v34  ;;  %2285 = vmatprep.subr.mxu1 %v2493_v34 }
 0x1ff   :  { %2253 = vmatpush3.msra.mxu0 %v903_v44  ;;  %2286 = vmatpush3.msra.mxu1 %v1703_v59  ;;  %v1723_v59 = vld [vmem:[%s3589_s2 + $0x138] sm:$0xff] }
 0x200   :  { %2254 = vmatprep.subr.mxu0 %v2493_v34  ;;  %2287 = vmatprep.subr.mxu1 %v2493_v34 }
 0x201   :  { %2255 = vmatpush3.msra.mxu0 %v902_v45  ;;  %2288 = vmatpush3.msra.mxu1 %v1702_v60  ;;  %v1722_v60 = vld [vmem:[%s3589_s2 + $0x130] sm:$0xff] }
 0x202   :  { %2256 = vmatprep.subr.mxu0 %v2493_v34  ;;  %2289 = vmatprep.subr.mxu1 %v2493_v34 }
 0x203   :  { %2257 = vmatpush3.msra.mxu0 %v901_v46  ;;  %2290 = vmatpush3.msra.mxu1 %v1701_v61  ;;  %v1721_v61 = vld [vmem:[%s3589_s2 + $0x128] sm:$0xff] }
 0x204   :  { %2258 = vmatprep.subr.mxu0 %v2493_v34  ;;  %2291 = vmatprep.subr.mxu1 %v2493_v34 }
 0x205   :  { %2259 = vmatpush3.msra.mxu0 %v900_v47 }
 0x206   :  { %2260 = vmatprep.subr.mxu0 %v2493_v34 }
 0x207   :  { %2261 = vmatpush3.msra.mxu0 %v899_v48  ;;  %v1700_v48 = vld [vmem:[%s3589_s2 + $0x90] sm:$0xff] }
 0x208   :  { %2300 = vmatprep.subr.mxu0 %v2493_v34  ;;  %2292 = vmatpush3.msra.mxu1 %v1700_v48 }
 0x209   :  { %2293 = vmatprep.subr.mxu1 %v2493_v34 }
 0x20a   :  { %2294 = vmatpush3.msra.mxu1 %v1699_v49  ;;  %v1191_v49 = vstv %s1733_s26 }
 0x20b   :  { %2295 = vmatprep.subr.mxu1 %v2493_v34 }
 0x20c   :  { %2296 = vmatpush3.msra.mxu1 %v1698_v50 }
 0x20d   :  { %2335 = vmatprep.subr.mxu1 %v2493_v34 }
 0x2a2   :  { %v2226_v0 = vpop.f32.mrf.mxu1 }
 0x2a4   :  { %v852_v7 = vpop.f32.mrf.mxu1 }
 0x2a6   :  { %v1965_v62 = vpop.f32.mrf.mxu0 }
 0x2a7   :  { %v2229_v14 = vpop.f32.mrf.mxu1 }
 0x2a8   :  { %v1966_v2 = vpop.f32.mrf.mxu0 }
 0x2a9   :  { %v1967_v3 = vadd.f32 %v1966_v2, %v1965_v62  ;;  %v862_v24 = vpop.f32.mrf.mxu1  ;;  %v1720_v62 = vld [vmem:[%s3589_s2 + $0x120] sm:$0xff] }
 0x2aa   :  { %v1968_v4 = vpop.f32.mrf.mxu0 }
 0x2ab   :  { %v768_v5 = vadd.f32 %v1967_v3, %v1690_v1  ;;  %v997_v3 = vstv %s1697_s13  ;;  %s1769_s13 = sld [smem:[#allocation2 + $0x7]] }
 0x2ac   :  { %v1969_v8 = vpop.f32.mrf.mxu0 }
 0x2ad   :  { %v853_v9 = vadd.f32 %v852_v7, %v768_v5  ;;  %v1970_v10 = vadd.f32 %v1969_v8, %v1968_v4 }
 0x2ae   :  { %v1971_v12 = vpop.f32.mrf.mxu0 }
 0x2af   :  { %v773_v13 = vadd.f32 %v1970_v10, %v1690_v1  ;;  %v877_v17 = vmul.f32 %v876_v11, %v853_v9  ;;  %vm872_vm15 = vcmp.gt.f32.partialorder %v853_v9, 0.0  ;;  %v1717_v10 = vld [vmem:[%s3589_s2 + $0x108] sm:$0xff] }
 0x2b0   :  { %v1972_v15 = vpop.f32.mrf.mxu0 }
 0x2b1   :  { %v858_v18 = vadd.f32 %v2226_v0, %v773_v13  ;;  %v1973_v20 = vadd.f32 %v1972_v15, %v1971_v12  ;;  %v881_v26 = vsel %vm872_vm15, %v853_v9, %v877_v17  ;;  %v1719_v0 = vld [vmem:[%s3589_s2 + $0x118] sm:$0xff]  ;;  %v1718_v9 = vld [vmem:[%s3589_s2 + $0x110] sm:$0xff]  ;;  %v1746_v15 = vld [vmem:[%s3589_s2 + $0x1e0] sm:$0xff] }
 0x2b2   :  { %v1974_v21 = vpop.f32.mrf.mxu0  ;;  %v1749_v12 = vld [vmem:[%s3589_s2 + $0x1f8] sm:$0xff]  ;;  %v1748_v13 = vld [vmem:[%s3589_s2 + $0x1f0] sm:$0xff] }
 0x2b3   :  { %vm873_vm0 = vcmp.gt.f32.partialorder %v858_v18, 0.0  ;;  %v878_v22 = vmul.f32 %v876_v11, %v858_v18  ;;  %v778_v23 = vadd.f32 %v1973_v20, %v1690_v1  ;;  %v1745_v17 = vld [vmem:[%s3589_s2 + $0x1d8] sm:$0xff]  ;;  %v1743_v20 = vld [vmem:[%s3589_s2 + $0x1c8] sm:$0xff] }
 0x2b4   :  { %v1975_v25 = vpop.f32.mrf.mxu0 }
 0x2b5   :  { %v882_v27 = vsel %vm873_vm0, %v858_v18, %v878_v22  ;;  %v863_v28 = vadd.f32 %v862_v24, %v778_v23  ;;  %v1976_v29 = vadd.f32 %v1975_v25, %v1974_v21  ;;  %v1744_v18 = vld [vmem:[%s3589_s2 + $0x1d0] sm:$0xff]  ;;  %v1742_v21 = vld [vmem:[%s3589_s2 + $0x1c0] sm:$0xff]  ;;  %v1741_v22 = vld [vmem:[%s3589_s2 + $0x1b8] sm:$0xff] }
 0x2b6   :  { %v885_v30 = vmax.f32 %v881_v26, %v882_v27  ;;  %v1740_v23 = vld [vmem:[%s3589_s2 + $0x1b0] sm:$0xff]  ;;  %v1739_v24 = vld [vmem:[%s3589_s2 + $0x1a8] sm:$0xff]  ;;  %v1738_v25 = vld [vmem:[%s3589_s2 + $0x1a0] sm:$0xff] }
 0x2b7   :  { %v783_v31 = vadd.f32 %v1976_v29, %v1690_v1  ;;  %v879_v32 = vmul.f32 %v876_v11, %v863_v28  ;;  %vm874_vm1 = vcmp.gt.f32.partialorder %v863_v28, 0.0  ;;  %v1696_v1 = vld [vmem:[%s3590_s3 + $0x3] ss:$0 sm:$0xff]  ;;  %v1737_v26 = vld [vmem:[%s3589_s2 + $0x198] sm:$0xff]  ;;  %v1714_v27 = vld [vmem:[%s3590_s3 + $0x4] ss:$0 sm:$0xff]  ;;  %v1094_v29 = vstv %s1715_s19 }
 0x2b8   :  { %v886_v6 = vrot.slane %v885_v30, 4 }
 0x2b9   :  { %v868_v33 = vadd.f32 %v2229_v14, %v783_v31  ;;  %v883_v19 = vsel %vm874_vm1, %v863_v28, %v879_v32  ;;  %v1747_v14 = vld [vmem:[%s3589_s2 + $0x1e8] sm:$0xff] }
 0x2ba   :  { %v887_v63 = vmax.f32 %v885_v30, %v886_v6 }
 0x2bb   :  { %vm875_vm2 = vcmp.gt.f32.partialorder %v868_v33, 0.0  ;;  %v880_v16 = vmul.f32 %v876_v11, %v868_v33  ;;  %v1716_v11 = vld [vmem:[%s3589_s2 + $0x100] sm:$0xff] }
 0x2bc   :  { %v888_v35 = vrot.slane %v887_v63, 2 }
 0x2bd   :  { %v884_v39 = vsel %vm875_vm2, %v868_v33, %v880_v16  ;;  %v1736_v33 = vld [vmem:[%s3589_s2 + $0x190] sm:$0xff]  ;;  %v1734_v16 = vld [vmem:[%s3589_s2 + $0x180] sm:$0xff] }
 0x2be   :  { %v892_v36 = vmax.f32 %v883_v19, %v884_v39  ;;  %v889_v40 = vmax.f32 %v887_v63, %v888_v35  ;;  %v1735_v63 = vld [vmem:[%s3589_s2 + $0x188] sm:$0xff]  ;;  %v1767_v19 = vld [vmem:[%s3589_s2 + $0x278] sm:$0xff]  ;;  %v1766_v39 = vld [vmem:[%s3589_s2 + $0x270] sm:$0xff] }
 0x2bf   :  { %v1765_v35 = vld [vmem:[%s3589_s2 + $0x268] sm:$0xff] }
 0x2c0   :  { %v893_v37 = vrot.slane %v892_v36, 4  ;;  %v890_v42 = vrot.slane %v889_v40, 1 }
 0x2c2   :  { %v894_v38 = vmax.f32 %v892_v36, %v893_v37  ;;  %v891_v45 = vmax.f32 %v889_v40, %v890_v42  ;;  %v1764_v36 = vld [vmem:[%s3589_s2 + $0x260] sm:$0xff]  ;;  %v1763_v37 = vld [vmem:[%s3589_s2 + $0x258] sm:$0xff]  ;;  %v1761_v40 = vld [vmem:[%s3589_s2 + $0x248] sm:$0xff] }
 0x2c3   :  { %v1759_v42 = vld [vmem:[%s3589_s2 + $0x238] sm:$0xff] }
 0x2c4   :  { %v895_v41 = vrot.slane %v894_v38, 2 }
 0x2c6   :  { %v896_v43 = vmax.f32 %v894_v38, %v895_v41  ;;  %v1762_v38 = vld [vmem:[%s3589_s2 + $0x250] sm:$0xff]  ;;  %v1760_v41 = vld [vmem:[%s3589_s2 + $0x240] sm:$0xff] }
 0x2c8   :  { %v897_v44 = vrot.slane %v896_v43, 1 }
 0x2ca   :  { %v898_v46 = vmax.f32 %v896_v43, %v897_v44  ;;  %v1758_v43 = vld [vmem:[%s3589_s2 + $0x230] sm:$0xff]  ;;  %v1757_v44 = vld [vmem:[%s3589_s2 + $0x228] sm:$0xff] }
 0x2cc   :  { %v923_v47 = vsel %vm922_vm3, %v898_v46, %v891_v45  ;;  %v1756_v45 = vld [vmem:[%s3589_s2 + $0x220] sm:$0xff]  ;;  %v1755_v46 = vld [vmem:[%s3589_s2 + $0x218] sm:$0xff] }
 0x2cd   :  { %2263 = vmatmul.mubr.f32.vlgmr.msra.gmra.mxu0 %v923_v47  ;;  %v1732_v47 = vld [vmem:[%s3590_s3 + $0x5] ss:$0 sm:$0xff] }
 0x2ce   :  { %2332 = vmatprep.mubr.msk.f32.mxu0 %vm2494_vm14, %v2493_v34  ;;  %2301 = vmatpush3.msra.mxu0 %v1731_v51 }
 0x2cf   :  { %2302 = vmatprep.subr.mxu0 %v2493_v34 }
 0x2d0   :  { %2303 = vmatpush3.msra.mxu0 %v1730_v52 }
 0x2d1   :  { %2304 = vmatprep.subr.mxu0 %v2493_v34 }
 0x2d2   :  { %2305 = vmatpush3.msra.mxu0 %v1729_v53 }
 0x2d3   :  { %2306 = vmatprep.subr.mxu0 %v2493_v34 }
 0x2d4   :  { %2307 = vmatpush3.msra.mxu0 %v1728_v54  ;;  %v1754_v54 = vld [vmem:[%s3589_s2 + $0x210] sm:$0xff] }
 0x2d5   :  { %2308 = vmatprep.subr.mxu0 %v2493_v34 }
 0x2d6   :  { %2309 = vmatpush3.msra.mxu0 %v1727_v55  ;;  %v1753_v55 = vld [vmem:[%s3589_s2 + $0x208] sm:$0xff] }
 0x2d7   :  { %2310 = vmatprep.subr.mxu0 %v2493_v34 }
 0x2d8   :  { %2311 = vmatpush3.msra.mxu0 %v1726_v56  ;;  %v1752_v56 = vld [vmem:[%s3589_s2 + $0x200] sm:$0xff] }
 0x2d9   :  { %2312 = vmatprep.subr.mxu0 %v2493_v34 }
 0x2da   :  { %2313 = vmatpush3.msra.mxu0 %v1725_v57  ;;  %v1785_v57 = vld [vmem:[%s3589_s2 + $0x2f8] sm:$0xff] }
 0x2db   :  { %2314 = vmatprep.subr.mxu0 %v2493_v34 }
 0x2dc   :  { %2315 = vmatpush3.msra.mxu0 %v1724_v58  ;;  %v1784_v58 = vld [vmem:[%s3589_s2 + $0x2f0] sm:$0xff] }
 0x2dd   :  { %2316 = vmatprep.subr.mxu0 %v2493_v34 }
 0x2de   :  { %2317 = vmatpush3.msra.mxu0 %v1723_v59  ;;  %v1783_v59 = vld [vmem:[%s3589_s2 + $0x2e8] sm:$0xff] }
 0x2df   :  { %2318 = vmatprep.subr.mxu0 %v2493_v34 }
 0x2e0   :  { %2319 = vmatpush3.msra.mxu0 %v1722_v60  ;;  %v1782_v60 = vld [vmem:[%s3589_s2 + $0x2e0] sm:$0xff] }
 0x2e1   :  { %2320 = vmatprep.subr.mxu0 %v2493_v34 }
 0x2e2   :  { %2321 = vmatpush3.msra.mxu0 %v1721_v61  ;;  %v1781_v61 = vld [vmem:[%s3589_s2 + $0x2d8] sm:$0xff] }
 0x2e3   :  { %2322 = vmatprep.subr.mxu0 %v2493_v34 }
 0x2e4   :  { %2323 = vmatpush3.msra.mxu0 %v1720_v62  ;;  %v1780_v62 = vld [vmem:[%s3589_s2 + $0x2d0] sm:$0xff] }
 0x2e5   :  { %2324 = vmatprep.subr.mxu0 %v2493_v34 }
 0x2e6   :  { %2325 = vmatpush3.msra.mxu0 %v1719_v0  ;;  %v1779_v0 = vld [vmem:[%s3589_s2 + $0x2c8] sm:$0xff] }
 0x2e7   :  { %2326 = vmatprep.subr.mxu0 %v2493_v34 }
 0x2e8   :  { %2327 = vmatpush3.msra.mxu0 %v1718_v9 }
 0x2e9   :  { %2328 = vmatprep.subr.mxu0 %v2493_v34 }
 0x2ea   :  { %2329 = vmatpush3.msra.mxu0 %v1717_v10  ;;  %v1288_v10 = vstv %s1751_s6 }
 0x2eb   :  { %2330 = vmatprep.subr.mxu0 %v2493_v34 }
 0x2ec   :  { %2331 = vmatpush3.msra.mxu0 %v1716_v11 }
 0x2ed   :  { %2370 = vmatprep.subr.mxu0 %v2493_v34 }
 0x38d   :  { %v991_v2 = vpop.f32.mrf.mxu0 }
 0x38e   :  { %v992_v4 = vadd.f32 %v1696_v1, %v991_v2  ;;  %v1778_v1 = vld [vmem:[%s3589_s2 + $0x2c0] sm:$0xff]  ;;  %v1777_v2 = vld [vmem:[%s3589_s2 + $0x2b8] sm:$0xff] }
 0x38f   :  { %v2264_v5 = vpop.f32.mrf.mxu0 }
 0x390   :  { %vm996_vm4 = vcmp.gt.f32.partialorder %v992_v4, 0.0  ;;  %v998_v7 = vmul.f32 %v997_v3, %v992_v4  ;;  %v1776_v3 = vld [vmem:[%s3589_s2 + $0x2b0] sm:$0xff]  ;;  %v1774_v5 = vld [vmem:[%s3589_s2 + $0x2a0] sm:$0xff] }
 0x392   :  { %v999_v8 = vsel %vm996_vm4, %v992_v4, %v998_v7  ;;  %v1775_v4 = vld [vmem:[%s3589_s2 + $0x2a8] sm:$0xff]  ;;  %v1773_v7 = vld [vmem:[%s3589_s2 + $0x298] sm:$0xff] }
 0x393   :  { %2298 = vmatmul.mubr.f32.vlgmr.msra.gmra.mxu1 %v999_v8  ;;  %v1750_v8 = vld [vmem:[%s3590_s3 + $0x6] ss:$0 sm:$0xff] }
 0x394   :  { %2367 = vmatprep.mubr.msk.f32.mxu1 %vm2494_vm14, %v2493_v34  ;;  %2336 = vmatpush3.msra.mxu1 %v1749_v12 }
 0x395   :  { %2337 = vmatprep.subr.mxu1 %v2493_v34 }
 0x396   :  { %2338 = vmatpush3.msra.mxu1 %v1748_v13 }
 0x397   :  { %2339 = vmatprep.subr.mxu1 %v2493_v34 }
 0x398   :  { %2340 = vmatpush3.msra.mxu1 %v1747_v14 }
 0x399   :  { %2341 = vmatprep.subr.mxu1 %v2493_v34 }
 0x39a   :  { %2342 = vmatpush3.msra.mxu1 %v1746_v15  ;;  %v1772_v15 = vld [vmem:[%s3589_s2 + $0x290] sm:$0xff] }
 0x39b   :  { %2343 = vmatprep.subr.mxu1 %v2493_v34 }
 0x39c   :  { %2344 = vmatpush3.msra.mxu1 %v1745_v17  ;;  %v1771_v17 = vld [vmem:[%s3589_s2 + $0x288] sm:$0xff] }
 0x39d   :  { %2345 = vmatprep.subr.mxu1 %v2493_v34 }
 0x39e   :  { %2346 = vmatpush3.msra.mxu1 %v1744_v18  ;;  %v1770_v18 = vld [vmem:[%s3589_s2 + $0x280] sm:$0xff] }
 0x39f   :  { %2347 = vmatprep.subr.mxu1 %v2493_v34 }
 0x3a0   :  { %2348 = vmatpush3.msra.mxu1 %v1743_v20  ;;  %v1803_v20 = vld [vmem:[%s3589_s2 + $0x378] sm:$0xff] }
 0x3a1   :  { %2349 = vmatprep.subr.mxu1 %v2493_v34 }
 0x3a2   :  { %2350 = vmatpush3.msra.mxu1 %v1742_v21  ;;  %v1802_v21 = vld [vmem:[%s3589_s2 + $0x370] sm:$0xff] }
 0x3a3   :  { %2351 = vmatprep.subr.mxu1 %v2493_v34 }
 0x3a4   :  { %2352 = vmatpush3.msra.mxu1 %v1741_v22  ;;  %v1801_v22 = vld [vmem:[%s3589_s2 + $0x368] sm:$0xff] }
 0x3a5   :  { %2353 = vmatprep.subr.mxu1 %v2493_v34 }
 0x3a6   :  { %2354 = vmatpush3.msra.mxu1 %v1740_v23  ;;  %v1800_v23 = vld [vmem:[%s3589_s2 + $0x360] sm:$0xff] }
 0x3a7   :  { %2355 = vmatprep.subr.mxu1 %v2493_v34 }
 0x3a8   :  { %2356 = vmatpush3.msra.mxu1 %v1739_v24  ;;  %v1799_v24 = vld [vmem:[%s3589_s2 + $0x358] sm:$0xff] }
 0x3a9   :  { %2357 = vmatprep.subr.mxu1 %v2493_v34 }
 0x3aa   :  { %2358 = vmatpush3.msra.mxu1 %v1738_v25  ;;  %v1798_v25 = vld [vmem:[%s3589_s2 + $0x350] sm:$0xff] }
 0x3ab   :  { %2359 = vmatprep.subr.mxu1 %v2493_v34 }
 0x3ac   :  { %2360 = vmatpush3.msra.mxu1 %v1737_v26  ;;  %v1797_v26 = vld [vmem:[%s3589_s2 + $0x348] sm:$0xff] }
 0x3ad   :  { %2361 = vmatprep.subr.mxu1 %v2493_v34 }
 0x3ae   :  { %2362 = vmatpush3.msra.mxu1 %v1736_v33 }
 0x3af   :  { %2363 = vmatprep.subr.mxu1 %v2493_v34 }
 0x3b0   :  { %2364 = vmatpush3.msra.mxu1 %v1735_v63  ;;  %v1385_v63 = vstv %s1769_s13 }
 0x3b1   :  { %2365 = vmatprep.subr.mxu1 %v2493_v34 }
 0x3b2   :  { %2366 = vmatpush3.msra.mxu1 %v1734_v16 }
 0x3b3   :  { %2405 = vmatprep.subr.mxu1 %v2493_v34 }
 0x453   :  { %v1088_v28 = vpop.f32.mrf.mxu1 }
 0x454   :  { %v1089_v30 = vadd.f32 %v1714_v27, %v1088_v28  ;;  %v1796_v27 = vld [vmem:[%s3589_s2 + $0x340] sm:$0xff]  ;;  %v1795_v28 = vld [vmem:[%s3589_s2 + $0x338] sm:$0xff] }
 0x455   :  { %v2299_v31 = vpop.f32.mrf.mxu1 }
 0x456   :  { %vm1093_vm5 = vcmp.gt.f32.partialorder %v1089_v30, 0.0  ;;  %v1095_v6 = vmul.f32 %v1094_v29, %v1089_v30  ;;  %v1794_v29 = vld [vmem:[%s3589_s2 + $0x330] sm:$0xff]  ;;  %v1792_v31 = vld [vmem:[%s3589_s2 + $0x320] sm:$0xff] }
 0x458   :  { %v1096_v32 = vsel %vm1093_vm5, %v1089_v30, %v1095_v6  ;;  %v1793_v30 = vld [vmem:[%s3589_s2 + $0x328] sm:$0xff]  ;;  %v1791_v6 = vld [vmem:[%s3589_s2 + $0x318] sm:$0xff] }
 0x459   :  { %2333 = vmatmul.mubr.f32.vlgmr.msra.gmra.mxu0 %v1096_v32  ;;  %v1768_v32 = vld [vmem:[%s3590_s3 + $0x7] ss:$0 sm:$0xff] }
 0x45a   :  { %2402 = vmatprep.mubr.msk.f32.mxu0 %vm2494_vm14, %v2493_v34  ;;  %2371 = vmatpush3.msra.mxu0 %v1767_v19 }
 0x45b   :  { %2372 = vmatprep.subr.mxu0 %v2493_v34 }
 0x45c   :  { %2373 = vmatpush3.msra.mxu0 %v1766_v39 }
 0x45d   :  { %2374 = vmatprep.subr.mxu0 %v2493_v34 }
 0x45e   :  { %2375 = vmatpush3.msra.mxu0 %v1765_v35 }
 0x45f   :  { %2376 = vmatprep.subr.mxu0 %v2493_v34 }
 0x460   :  { %2377 = vmatpush3.msra.mxu0 %v1764_v36  ;;  %v1790_v36 = vld [vmem:[%s3589_s2 + $0x310] sm:$0xff] }
 0x461   :  { %2378 = vmatprep.subr.mxu0 %v2493_v34 }
 0x462   :  { %2379 = vmatpush3.msra.mxu0 %v1763_v37  ;;  %v1789_v37 = vld [vmem:[%s3589_s2 + $0x308] sm:$0xff] }
 0x463   :  { %2380 = vmatprep.subr.mxu0 %v2493_v34 }
 0x464   :  { %2381 = vmatpush3.msra.mxu0 %v1762_v38  ;;  %v1788_v38 = vld [vmem:[%s3589_s2 + $0x300] sm:$0xff] }
 0x465   :  { %2382 = vmatprep.subr.mxu0 %v2493_v34 }
 0x466   :  { %2383 = vmatpush3.msra.mxu0 %v1761_v40  ;;  %v1786_v40 = vld [vmem:[%s3590_s3 + $0x8] ss:$0 sm:$0xff] }
 0x467   :  { %2384 = vmatprep.subr.mxu0 %v2493_v34 }
 0x468   :  { %2385 = vmatpush3.msra.mxu0 %v1760_v41 }
 0x469   :  { %2386 = vmatprep.subr.mxu0 %v2493_v34 }
 0x46a   :  { %2387 = vmatpush3.msra.mxu0 %v1759_v42  ;;  %v1482_v42 = vstv %s1787_s21 }
 0x46b   :  { %2388 = vmatprep.subr.mxu0 %v2493_v34 }
 0x46c   :  { %2389 = vmatpush3.msra.mxu0 %v1758_v43 }
 0x46d   :  { %2390 = vmatprep.subr.mxu0 %v2493_v34 }
 0x46e   :  { %2391 = vmatpush3.msra.mxu0 %v1757_v44 }
 0x46f   :  { %2392 = vmatprep.subr.mxu0 %v2493_v34 }
 0x470   :  { %2393 = vmatpush3.msra.mxu0 %v1756_v45 }
 0x471   :  { %2394 = vmatprep.subr.mxu0 %v2493_v34 }
 0x472   :  { %2395 = vmatpush3.msra.mxu0 %v1755_v46 }
 0x473   :  { %2396 = vmatprep.subr.mxu0 %v2493_v34 }
 0x474   :  { %2397 = vmatpush3.msra.mxu0 %v1754_v54 }
 0x475   :  { %2398 = vmatprep.subr.mxu0 %v2493_v34 }
 0x476   :  { %2399 = vmatpush3.msra.mxu0 %v1753_v55 }
 0x477   :  { %2400 = vmatprep.subr.mxu0 %v2493_v34 }
 0x478   :  { %2401 = vmatpush3.msra.mxu0 %v1752_v56 }
 0x479   :  { %2440 = vmatprep.subr.mxu0 %v2493_v34 }
 0x519   :  { %v1185_v48 = vpop.f32.mrf.mxu0 }
 0x51a   :  { %v1186_v50 = vadd.f32 %v1732_v47, %v1185_v48  ;;  %v1804_v47 = vld [vmem:[%s3590_s3 + $0x9] ss:$0 sm:$0xff] }
 0x51b   :  { %v2334_v51 = vpop.f32.mrf.mxu0 }
 0x51c   :  { %vm1190_vm6 = vcmp.gt.f32.partialorder %v1186_v50, 0.0  ;;  %v1192_v52 = vmul.f32 %v1191_v49, %v1186_v50 }
 0x51e   :  { %v1193_v53 = vsel %vm1190_vm6, %v1186_v50, %v1192_v52 }
 0x51f   :  { %2368 = vmatmul.mubr.f32.vlgmr.msra.gmra.mxu1 %v1193_v53 }
 0x520   :  { %2437 = vmatprep.mubr.msk.f32.mxu1 %vm2494_vm14, %v2493_v34  ;;  %2406 = vmatpush3.msra.mxu1 %v1785_v57 }
 0x521   :  { %2407 = vmatprep.subr.mxu1 %v2493_v34 }
 0x522   :  { %2408 = vmatpush3.msra.mxu1 %v1784_v58 }
 0x523   :  { %2409 = vmatprep.subr.mxu1 %v2493_v34 }
 0x524   :  { %2410 = vmatpush3.msra.mxu1 %v1783_v59 }
 0x525   :  { %2411 = vmatprep.subr.mxu1 %v2493_v34 }
 0x526   :  { %2412 = vmatpush3.msra.mxu1 %v1782_v60 }
 0x527   :  { %2413 = vmatprep.subr.mxu1 %v2493_v34 }
 0x528   :  { %2414 = vmatpush3.msra.mxu1 %v1781_v61 }
 0x529   :  { %2415 = vmatprep.subr.mxu1 %v2493_v34 }
 0x52a   :  { %2416 = vmatpush3.msra.mxu1 %v1780_v62 }
 0x52b   :  { %2417 = vmatprep.subr.mxu1 %v2493_v34 }
 0x52c   :  { %2418 = vmatpush3.msra.mxu1 %v1779_v0 }
 0x52d   :  { %2419 = vmatprep.subr.mxu1 %v2493_v34 }
 0x52e   :  { %2420 = vmatpush3.msra.mxu1 %v1778_v1 }
 0x52f   :  { %2421 = vmatprep.subr.mxu1 %v2493_v34 }
 0x530   :  { %2422 = vmatpush3.msra.mxu1 %v1777_v2 }
 0x531   :  { %2423 = vmatprep.subr.mxu1 %v2493_v34 }
 0x532   :  { %2424 = vmatpush3.msra.mxu1 %v1776_v3 }
 0x533   :  { %2425 = vmatprep.subr.mxu1 %v2493_v34 }
 0x534   :  { %2426 = vmatpush3.msra.mxu1 %v1775_v4 }
 0x535   :  { %2427 = vmatprep.subr.mxu1 %v2493_v34 }
 0x536   :  { %2428 = vmatpush3.msra.mxu1 %v1774_v5 }
 0x537   :  { %2429 = vmatprep.subr.mxu1 %v2493_v34 }
 0x538   :  { %2430 = vmatpush3.msra.mxu1 %v1773_v7 }
 0x539   :  { %2431 = vmatprep.subr.mxu1 %v2493_v34 }
 0x53a   :  { %2432 = vmatpush3.msra.mxu1 %v1772_v15 }
 0x53b   :  { %2433 = vmatprep.subr.mxu1 %v2493_v34 }
 0x53c   :  { %2434 = vmatpush3.msra.mxu1 %v1771_v17 }
 0x53d   :  { %2435 = vmatprep.subr.mxu1 %v2493_v34 }
 0x53e   :  { %2436 = vmatpush3.msra.mxu1 %v1770_v18 }
 0x5df   :  { %v1282_v9 = vpop.f32.mrf.mxu1 }
 0x5e0   :  { %v1283_v11 = vadd.f32 %v1750_v8, %v1282_v9 }
 0x5e1   :  { %v2369_v12 = vpop.f32.mrf.mxu1 }
 0x5e2   :  { %vm1287_vm7 = vcmp.gt.f32.partialorder %v1283_v11, 0.0  ;;  %v1289_v13 = vmul.f32 %v1288_v10, %v1283_v11 }
 0x5e4   :  { %v1290_v14 = vsel %vm1287_vm7, %v1283_v11, %v1289_v13 }
 0x5e5   :  { %2403 = vmatmul.mubr.f32.vlgmr.msra.gmra.mxu0 %v1290_v14 }
 0x5e6   :  { %2472 = vmatprep.mubr.msk.f32.mxu0 %vm2494_vm14, %v2493_v34  ;;  %2441 = vmatpush3.msra.mxu0 %v1803_v20 }
 0x5e7   :  { %2442 = vmatprep.subr.mxu0 %v2493_v34 }
 0x5e8   :  { %2443 = vmatpush3.msra.mxu0 %v1802_v21 }
 0x5e9   :  { %2444 = vmatprep.subr.mxu0 %v2493_v34 }
 0x5ea   :  { %2445 = vmatpush3.msra.mxu0 %v1801_v22 }
 0x5eb   :  { %2446 = vmatprep.subr.mxu0 %v2493_v34 }
 0x5ec   :  { %2447 = vmatpush3.msra.mxu0 %v1800_v23 }
 0x5ed   :  { %2448 = vmatprep.subr.mxu0 %v2493_v34 }
 0x5ee   :  { %2449 = vmatpush3.msra.mxu0 %v1799_v24 }
 0x5ef   :  { %2450 = vmatprep.subr.mxu0 %v2493_v34 }
 0x5f0   :  { %2451 = vmatpush3.msra.mxu0 %v1798_v25 }
 0x5f1   :  { %2452 = vmatprep.subr.mxu0 %v2493_v34 }
 0x5f2   :  { %2453 = vmatpush3.msra.mxu0 %v1797_v26 }
 0x5f3   :  { %2454 = vmatprep.subr.mxu0 %v2493_v34 }
 0x5f4   :  { %2455 = vmatpush3.msra.mxu0 %v1796_v27 }
 0x5f5   :  { %2456 = vmatprep.subr.mxu0 %v2493_v34 }
 0x5f6   :  { %2457 = vmatpush3.msra.mxu0 %v1795_v28 }
 0x5f7   :  { %2458 = vmatprep.subr.mxu0 %v2493_v34 }
 0x5f8   :  { %2459 = vmatpush3.msra.mxu0 %v1794_v29 }
 0x5f9   :  { %2460 = vmatprep.subr.mxu0 %v2493_v34 }
 0x5fa   :  { %2461 = vmatpush3.msra.mxu0 %v1793_v30 }
 0x5fb   :  { %2462 = vmatprep.subr.mxu0 %v2493_v34 }
 0x5fc   :  { %2463 = vmatpush3.msra.mxu0 %v1792_v31 }
 0x5fd   :  { %2464 = vmatprep.subr.mxu0 %v2493_v34 }
 0x5fe   :  { %2465 = vmatpush3.msra.mxu0 %v1791_v6 }
 0x5ff   :  { %2466 = vmatprep.subr.mxu0 %v2493_v34 }
 0x600   :  { %2467 = vmatpush3.msra.mxu0 %v1790_v36 }
 0x601   :  { %2468 = vmatprep.subr.mxu0 %v2493_v34 }
 0x602   :  { %2469 = vmatpush3.msra.mxu0 %v1789_v37 }
 0x603   :  { %2470 = vmatprep.subr.mxu0 %v2493_v34 }
 0x604   :  { %2471 = vmatpush3.msra.mxu0 %v1788_v38 }
 0x6a5   :  { %v1379_v33 = vpop.f32.mrf.mxu0 }
 0x6a6   :  { %v1380_v16 = vadd.f32 %v1768_v32, %v1379_v33 }
 0x6a7   :  { %v2404_v19 = vpop.f32.mrf.mxu0 }
 0x6a8   :  { %vm1384_vm8 = vcmp.gt.f32.partialorder %v1380_v16, 0.0  ;;  %v1386_v39 = vmul.f32 %v1385_v63, %v1380_v16 }
 0x6aa   :  { %v1387_v35 = vsel %vm1384_vm8, %v1380_v16, %v1386_v39 }
 0x6ab   :  { %2438 = vmatmul.mubr.f32.vlgmr.msra.gmra.mxu1 %v1387_v35 }
 0x76b   :  { %v1476_v41 = vpop.f32.mrf.mxu1 }
 0x76c   :  { %v1477_v43 = vadd.f32 %v1786_v40, %v1476_v41 }
 0x76d   :  { %v2439_v44 = vpop.f32.mrf.mxu1 }
 0x76e   :  { %vm1481_vm9 = vcmp.gt.f32.partialorder %v1477_v43, 0.0  ;;  %v1483_v45 = vmul.f32 %v1482_v42, %v1477_v43 }
 0x770   :  { %v1484_v46 = vsel %vm1481_vm9, %v1477_v43, %v1483_v45 }
 0x771   :  { %2473 = vmatmul.mubr.f32.vlgmr.msra.gmra.mxu0 %v1484_v46 }
 0x831   :  { %v1573_v48 = vpop.f32.mrf.mxu0 }
 0x832   :  { %v1574_v34 = vadd.f32 %v1804_v47, %v1573_v48 }
 0x833   :  { %v2474_v49 = vpop.f32.mrf.mxu0 }
 0x834   :  { %1577 = vst [vmem:[%s3592_s5] sm:$0x3] %v1574_v34 }
 0x835   :  { %1582 = vsyncpa [#allocation3], 1 }

</bundles_post_ra>
